<compile_context>
chip_gen: v7x
topology: tpu7x:2x2x1
jax: 0.10.0
libtpu: 0.0.40
codegen_flags: <defaults>
</compile_context>

<pallas_src>
import jax
import jax.numpy as jnp
from jax.experimental import pallas as pl
from jax.experimental.pallas import tpu as pltpu


D_IN, H1, H2, H3 = 243, 112, 60, 30
D_IN_PAD, H_PAD = 256, 128  # MXU / vreg aligned sizes


def _mlp_kernel(x_ref, w1_ref, b1_ref, w2_ref, b2_ref, w3_ref, b3_ref,
                w4_ref, b4_ref, o_ref):
    bf16 = jnp.bfloat16
    x = x_ref[...]                                                       # (bm, 256) bf16
    h = jnp.dot(x, w1_ref[...], preferred_element_type=jnp.float32) + b1_ref[...]
    h = jnp.maximum(h, 0.0)                                              # (bm, 128) f32
    h = jnp.dot(h.astype(bf16), w2_ref[...],
                preferred_element_type=jnp.float32) + b2_ref[...]
    h = jnp.maximum(h, 0.0)
    h = jnp.dot(h.astype(bf16), w3_ref[...],
                preferred_element_type=jnp.float32) + b3_ref[...]
    h = jnp.maximum(h, 0.0)                                              # (bm, 128) f32
    # Layer 4 (30 -> 1, zero-padded to 128 lanes): broadcast-mul + lane reduce
    # (VPU + XLU, both have slack) instead of an N=1 MXU matmul.  f32 math.
    y = jnp.sum(h * w4_ref[...], axis=1, keepdims=True) + b4_ref[...]    # (bm, 1)
    o_ref[...] = y.astype(o_ref.dtype)


def mlp_forward(x, params, *, bm=1024):
    """Net.forward as one Pallas kernel, tiled over the batch (bm rows / grid step).

    For real workloads keep bm at 1024-4096 (multiple of 128); use smaller bm
    only for tiny demo batches so the grid still has >= 2 steps (v7x megacore).
    """
    assert bm % 128 == 0, "batch tile must be a multiple of 128 (lane width)"
    B, d_in = x.shape
    assert d_in == D_IN
    b_pad = ((B + bm - 1) // bm) * bm  # pad batch so any B works

    w1, w2, w3, w4 = params["w1"], params["w2"], params["w3"], params["w4"]
    b1, b2, b3, b4 = params["b1"], params["b2"], params["b3"], params["b4"]
    f32, bf16 = jnp.float32, jnp.bfloat16

    # Single wrapper-side op on x: fused zero-pad + cast to bf16 (half-size copy,
    # no transpose).  Weights are tiny; pad + cast them once.
    xb = jnp.pad(x, ((0, b_pad - B), (0, D_IN_PAD - D_IN))).astype(bf16)        # (b_pad, 256)
    w1b = jnp.pad(w1, ((0, D_IN_PAD - D_IN), (0, H_PAD - H1))).astype(bf16)     # (256, 128)
    w2b = jnp.pad(w2, ((0, H_PAD - H1), (0, H_PAD - H2))).astype(bf16)          # (128, 128)
    w3b = jnp.pad(w3, ((0, H_PAD - H2), (0, H_PAD - H3))).astype(bf16)          # (128, 128)
    w4r = jnp.pad(w4, ((0, H_PAD - H3), (0, 0))).T.astype(f32)                  # (1, 128) f32
    b1r = jnp.pad(b1, (0, H_PAD - H1)).reshape(1, H_PAD).astype(f32)
    b2r = jnp.pad(b2, (0, H_PAD - H2)).reshape(1, H_PAD).astype(f32)
    b3r = jnp.pad(b3, (0, H_PAD - H3)).reshape(1, H_PAD).astype(f32)
    b4s = b4.reshape(1, 1).astype(f32)

    def resident(arr):
        # Whole-array block, same block index every grid step -> fetched once,
        # stays resident in VMEM.
        return pl.BlockSpec(arr.shape, lambda i: (0,) * arr.ndim)

    grid = (b_pad // bm,)

    # Double-buffered x block is 2 * bm * 256 * 2 bytes (bf16); only very large
    # bm threatens v5e's 16 MiB scoped-VMEM default, so raise the cap only then.
    vmem_limit = 64 * 1024 * 1024 if bm >= 4096 else None

    out = pl.pallas_call(
        _mlp_kernel,
        out_shape=jax.ShapeDtypeStruct((b_pad, 1), f32),
        grid_spec=pl.GridSpec(
            grid=grid,
            in_specs=[
                # Streaming batch tile of the padded bf16 input (only array that streams).
                pl.BlockSpec((bm, D_IN_PAD), lambda i: (i, 0)),
                resident(w1b), resident(b1r),
                resident(w2b), resident(b2r),
                resident(w3b), resident(b3r),
                resident(w4r), resident(b4s),
            ],
            out_specs=pl.BlockSpec((bm, 1), lambda i: (i, 0)),
        ),
        compiler_params=pltpu.CompilerParams(
            dimension_semantics=("parallel",),   # shard batch tiles across TCs (v7x)
            vmem_limit_bytes=vmem_limit,
        ),
    )(xb, w1b, b1r, w2b, b2r, w3b, b3r, w4r, b4s)

    return out[:B]


def init_params(key):
    """Deterministic init mirroring Net.__init__: truncated normal (|z|<2) * 0.01
    for weights, zeros for biases."""
    def tnormal(k, shape, std=0.01):
        return jax.random.truncated_normal(k, -2.0, 2.0, shape, jnp.float32) * std

    k1, k2, k3, k4 = jax.random.split(key, 4)
    return {
        "w1": tnormal(k1, (D_IN, H1)),
        "w2": tnormal(k2, (H1, H2)),
        "w3": tnormal(k3, (H2, H3)),
        "w4": tnormal(k4, (H3, 1)),
        "b1": jnp.zeros((H1,), jnp.float32),
        "b2": jnp.zeros((H2,), jnp.float32),
        "b3": jnp.zeros((H3,), jnp.float32),
        "b4": jnp.zeros((1,), jnp.float32),
    }


def reference_forward(x, p):
    h = jax.nn.relu(x @ p["w1"] + p["b1"])
    h = jax.nn.relu(h @ p["w2"] + p["b2"])
    h = jax.nn.relu(h @ p["w3"] + p["b3"])
    return h @ p["w4"] + p["b4"]


if __name__ == "__main__":
    key = jax.random.PRNGKey(0)
    kx, kp = jax.random.split(key)
    B = 512  # small demo batch; bm=256 gives a 2-step grid (both v7x TCs busy)
    x = jax.random.normal(kx, (B, D_IN), jnp.float32)
    params = init_params(kp)

    out = jax.block_until_ready(mlp_forward(x, params, bm=256))

    ref = reference_forward(x, params)
    assert out.shape == (B, 1), out.shape
    # bf16 MXU path -> relaxed tolerance vs the f32 reference (outputs are ~1e-5
    # scale with this init; observed bf16-induced error is ~1e-7..1e-6).
    assert jnp.allclose(out, ref, atol=2e-6, rtol=5e-2), (
        "mismatch vs JAX reference; max abs diff = "
        f"{float(jnp.max(jnp.abs(out - ref)))}")
    print("KERNEL_OK")
</pallas_src>

<mosaic_0001>
module attributes {stable_mosaic.version = 11 : i64} {
  func.func @_mlp_kernel(%arg0: i32, %arg1: memref<256x256xbf16, #tpu.memory_space<vmem>>, %arg2: memref<256x128xbf16, #tpu.memory_space<vmem>>, %arg3: memref<1x128xf32, #tpu.memory_space<vmem>>, %arg4: memref<128x128xbf16, #tpu.memory_space<vmem>>, %arg5: memref<1x128xf32, #tpu.memory_space<vmem>>, %arg6: memref<128x128xbf16, #tpu.memory_space<vmem>>, %arg7: memref<1x128xf32, #tpu.memory_space<vmem>>, %arg8: memref<1x128xf32, #tpu.memory_space<vmem>>, %arg9: memref<1x1xf32, #tpu.memory_space<vmem>>, %arg10: memref<256x1xf32, #tpu.memory_space<vmem>>) attributes {dimension_semantics = [#tpu.dimension_semantics<parallel>], iteration_bounds = array<i64: 2>, scalar_prefetch = 0 : i64, scratch_operands = 0 : i64, tpu.core_type = #tpu.core_type<tc>, window_params = [{transform_indices = @transform_0, window_bounds = array<i64: 256, 256>}, {pipeline_mode = #tpu.pipeline_mode<synchronous>, transform_indices = @transform_1, window_bounds = array<i64: 256, 128>}, {pipeline_mode = #tpu.pipeline_mode<synchronous>, transform_indices = @transform_2, window_bounds = array<i64: 1, 128>}, {pipeline_mode = #tpu.pipeline_mode<synchronous>, transform_indices = @transform_3, window_bounds = array<i64: 128, 128>}, {pipeline_mode = #tpu.pipeline_mode<synchronous>, transform_indices = @transform_4, window_bounds = array<i64: 1, 128>}, {pipeline_mode = #tpu.pipeline_mode<synchronous>, transform_indices = @transform_5, window_bounds = array<i64: 128, 128>}, {pipeline_mode = #tpu.pipeline_mode<synchronous>, transform_indices = @transform_6, window_bounds = array<i64: 1, 128>}, {pipeline_mode = #tpu.pipeline_mode<synchronous>, transform_indices = @transform_7, window_bounds = array<i64: 1, 128>}, {pipeline_mode = #tpu.pipeline_mode<synchronous>, transform_indices = @transform_8, window_bounds = array<i64: 1, 1>}, {transform_indices = @transform_9, window_bounds = array<i64: 256, 1>}]} {
    %c0 = arith.constant 0 : index
    %c0_0 = arith.constant 0 : index
    %0 = vector.load %arg1[%c0, %c0_0] : memref<256x256xbf16, #tpu.memory_space<vmem>>, vector<256x256xbf16>
    %c0_1 = arith.constant 0 : index
    %c0_2 = arith.constant 0 : index
    %1 = vector.load %arg2[%c0_1, %c0_2] : memref<256x128xbf16, #tpu.memory_space<vmem>>, vector<256x128xbf16>
    %cst = arith.constant dense<0.000000e+00> : vector<256x128xf32>
    %2 = tpu.matmul %0, %1, %cst {dimension_numbers = #tpu.dot_dimension_numbers<[1], [0], [0], [1], [0, 0, 1, 1], [], []>} : vector<256x256xbf16>, vector<256x128xbf16>, vector<256x128xf32> -> vector<256x128xf32>
    %c0_3 = arith.constant 0 : index
    %c0_4 = arith.constant 0 : index
    %3 = vector.load %arg3[%c0_3, %c0_4] : memref<1x128xf32, #tpu.memory_space<vmem>>, vector<1x128xf32>
    %4 = vector.broadcast %3 : vector<1x128xf32> to vector<256x128xf32>
    %5 = arith.addf %2, %4 : vector<256x128xf32>
    %cst_5 = arith.constant 0.000000e+00 : f32
    %6 = vector.broadcast %cst_5 : f32 to vector<256x128xf32>
    %7 = arith.maximumf %5, %6 : vector<256x128xf32>
    %8 = arith.truncf %7 : vector<256x128xf32> to vector<256x128xbf16>
    %c0_6 = arith.constant 0 : index
    %c0_7 = arith.constant 0 : index
    %9 = vector.load %arg4[%c0_6, %c0_7] : memref<128x128xbf16, #tpu.memory_space<vmem>>, vector<128x128xbf16>
    %cst_8 = arith.constant dense<0.000000e+00> : vector<256x128xf32>
    %10 = tpu.matmul %8, %9, %cst_8 {dimension_numbers = #tpu.dot_dimension_numbers<[1], [0], [0], [1], [0, 0, 1, 1], [], []>} : vector<256x128xbf16>, vector<128x128xbf16>, vector<256x128xf32> -> vector<256x128xf32>
    %c0_9 = arith.constant 0 : index
    %c0_10 = arith.constant 0 : index
    %11 = vector.load %arg5[%c0_9, %c0_10] : memref<1x128xf32, #tpu.memory_space<vmem>>, vector<1x128xf32>
    %12 = vector.broadcast %11 : vector<1x128xf32> to vector<256x128xf32>
    %13 = arith.addf %10, %12 : vector<256x128xf32>
    %cst_11 = arith.constant 0.000000e+00 : f32
    %14 = vector.broadcast %cst_11 : f32 to vector<256x128xf32>
    %15 = arith.maximumf %13, %14 : vector<256x128xf32>
    %16 = arith.truncf %15 : vector<256x128xf32> to vector<256x128xbf16>
    %c0_12 = arith.constant 0 : index
    %c0_13 = arith.constant 0 : index
    %17 = vector.load %arg6[%c0_12, %c0_13] : memref<128x128xbf16, #tpu.memory_space<vmem>>, vector<128x128xbf16>
    %cst_14 = arith.constant dense<0.000000e+00> : vector<256x128xf32>
    %18 = tpu.matmul %16, %17, %cst_14 {dimension_numbers = #tpu.dot_dimension_numbers<[1], [0], [0], [1], [0, 0, 1, 1], [], []>} : vector<256x128xbf16>, vector<128x128xbf16>, vector<256x128xf32> -> vector<256x128xf32>
    %c0_15 = arith.constant 0 : index
    %c0_16 = arith.constant 0 : index
    %19 = vector.load %arg7[%c0_15, %c0_16] : memref<1x128xf32, #tpu.memory_space<vmem>>, vector<1x128xf32>
    %20 = vector.broadcast %19 : vector<1x128xf32> to vector<256x128xf32>
    %21 = arith.addf %18, %20 : vector<256x128xf32>
    %cst_17 = arith.constant 0.000000e+00 : f32
    %22 = vector.broadcast %cst_17 : f32 to vector<256x128xf32>
    %23 = arith.maximumf %21, %22 : vector<256x128xf32>
    %c0_18 = arith.constant 0 : index
    %c0_19 = arith.constant 0 : index
    %24 = vector.load %arg8[%c0_18, %c0_19] : memref<1x128xf32, #tpu.memory_space<vmem>>, vector<1x128xf32>
    %25 = vector.broadcast %24 : vector<1x128xf32> to vector<256x128xf32>
    %26 = arith.mulf %23, %25 : vector<256x128xf32>
    %cst_20 = arith.constant dense<0.000000e+00> : vector<256xf32>
    %27 = vector.multi_reduction <add>, %26, %cst_20 [1] : vector<256x128xf32> to vector<256xf32>
    %28 = vector.shape_cast %27 : vector<256xf32> to vector<256x1xf32>
    %c0_21 = arith.constant 0 : index
    %c0_22 = arith.constant 0 : index
    %29 = vector.load %arg9[%c0_21, %c0_22] : memref<1x1xf32, #tpu.memory_space<vmem>>, vector<1x1xf32>
    %30 = vector.broadcast %29 : vector<1x1xf32> to vector<256x1xf32>
    %31 = arith.addf %28, %30 : vector<256x1xf32>
    %c0_23 = arith.constant 0 : index
    %c0_24 = arith.constant 0 : index
    %32 = vector.load %arg10[%c0_23, %c0_24] : memref<256x1xf32, #tpu.memory_space<vmem>>, vector<256x1xf32>
    tpu.vector_store %arg10[%c0_23, %c0_24], %31 {strides = array<i32>} : memref<256x1xf32, #tpu.memory_space<vmem>>, vector<256x1xf32>,
    return
  }
  func.func @transform_0(%arg0: i32) -> (i32, i32) {
    %c0_i32 = arith.constant 0 : i32
    %c0_i32_0 = arith.constant 0 : i32
    return %arg0, %c0_i32 : i32, i32
  }
  func.func @transform_1(%arg0: i32) -> (i32, i32) {
    %c0_i32 = arith.constant 0 : i32
    %c0_i32_0 = arith.constant 0 : i32
    %c0_i32_1 = arith.constant 0 : i32
    return %c0_i32, %c0_i32_0 : i32, i32
  }
  func.func @transform_2(%arg0: i32) -> (i32, i32) {
    %c0_i32 = arith.constant 0 : i32
    %c0_i32_0 = arith.constant 0 : i32
    %c0_i32_1 = arith.constant 0 : i32
    return %c0_i32, %c0_i32_0 : i32, i32
  }
  func.func @transform_3(%arg0: i32) -> (i32, i32) {
    %c0_i32 = arith.constant 0 : i32
    %c0_i32_0 = arith.constant 0 : i32
    %c0_i32_1 = arith.constant 0 : i32
    return %c0_i32, %c0_i32_0 : i32, i32
  }
  func.func @transform_4(%arg0: i32) -> (i32, i32) {
    %c0_i32 = arith.constant 0 : i32
    %c0_i32_0 = arith.constant 0 : i32
    %c0_i32_1 = arith.constant 0 : i32
    return %c0_i32, %c0_i32_0 : i32, i32
  }
  func.func @transform_5(%arg0: i32) -> (i32, i32) {
    %c0_i32 = arith.constant 0 : i32
    %c0_i32_0 = arith.constant 0 : i32
    %c0_i32_1 = arith.constant 0 : i32
    return %c0_i32, %c0_i32_0 : i32, i32
  }
  func.func @transform_6(%arg0: i32) -> (i32, i32) {
    %c0_i32 = arith.constant 0 : i32
    %c0_i32_0 = arith.constant 0 : i32
    %c0_i32_1 = arith.constant 0 : i32
    return %c0_i32, %c0_i32_0 : i32, i32
  }
  func.func @transform_7(%arg0: i32) -> (i32, i32) {
    %c0_i32 = arith.constant 0 : i32
    %c0_i32_0 = arith.constant 0 : i32
    %c0_i32_1 = arith.constant 0 : i32
    return %c0_i32, %c0_i32_0 : i32, i32
  }
  func.func @transform_8(%arg0: i32) -> (i32, i32) {
    %c0_i32 = arith.constant 0 : i32
    %c0_i32_0 = arith.constant 0 : i32
    %c0_i32_1 = arith.constant 0 : i32
    return %c0_i32, %c0_i32_0 : i32, i32
  }
  func.func @transform_9(%arg0: i32) -> (i32, i32) {
    %c0_i32 = arith.constant 0 : i32
    %c0_i32_0 = arith.constant 0 : i32
    return %arg0, %c0_i32 : i32, i32
  }
}

</mosaic_0001>

<bundles_post_ra>
// kernel: tpu_custom_call.1
= control target key start
LH: loop header
LB: loop body
LE: loop exit
PB: predicated region body
PF: predicated region fallthrough
CT: control target
= control target key end

     0   :  { %s2975_s0 = inlined_call_operand.hbm [shape: bf16[512,256], index: 0, kind: input, shape index: {}]   ;;  %s2976_s1 = inlined_call_operand.hbm [shape: bf16[256,128], index: 1, kind: input, shape index: {}]   ;;  %s2977_s2 = inlined_call_operand.vmem [shape: f32[1,128], index: 2, kind: input, shape index: {}]   ;;  %s2978_s3 = inlined_call_operand.hbm [shape: bf16[128,128], index: 3, kind: input, shape index: {}]   ;;  %s2979_s4 = inlined_call_operand.vmem [shape: f32[1,128], index: 4, kind: input, shape index: {}]   ;;  %s2980_s5 = inlined_call_operand.hbm [shape: bf16[128,128], index: 5, kind: input, shape index: {}]   ;;  %s2981_s6 = inlined_call_operand.vmem [shape: f32[1,128], index: 6, kind: input, shape index: {}]   ;;  %s2982_s7 = inlined_call_operand.vmem [shape: f32[1,128], index: 7, kind: input, shape index: {}]   ;;  %s2983_s8 = inlined_call_operand.<no memory space> [shape: f32[1,1], index: 8, kind: input, shape index: {}]   ;;  %s2984_s9 = inlined_call_operand.vmem [shape: f32[512,1], index: 9, kind: output, shape index: {}]  }
   0x1   :  { %v14_v0 = vstv %s2983_s8 }
   0x2   :  { %15 = vst [vmem:[#allocation2] sm:$0x1] %v14_v0 }
   0x3   :  { %16 = vsyncpa [#allocation4], 0 }
   0x4   :  { %18 = vsyncpa [#allocation4 + $0x1], 0 }
   0x5   :  { %19 = vsyncpa [#allocation6], 0 }
   0x6   :  { %20 = vsyncpa [#allocation9], 0  ;;  %s2474_s11 = smov 0   ;;  %s2476_s12 = smov 0  }
   0x7   :  { %s2478_s13 = smov 0   ;;  %s2480_s14 = smov 0  }
   0x8 LB: > { %s2987_s8 = sadd.s32 4294967295, %s2411_s14   ;;  %p46_p0 = scmp.ne.s32.totalorder %s2403_s12, %s2399_s11  ;;  %s2411_s14 = sphi %s2480_s14, %s3003_s14   ;;  %s2407_s13 = sphi %s2478_s13, %s3002_s13   ;;  %s2403_s12 = sphi %s2476_s12, %s3001_s12   ;;  %s2399_s11 = sphi %s2474_s11, %s3000_s11  }
   0x9   : > { %p2496_p1 = scmp.eq.s32.totalorder %s2987_s8, 0  ;;  %p1756_p2 = scmp.ge.s32.totalorder %s2411_s14, 1 }
   0xa   : > { %p251_p3 = scmp.lt.s32.totalorder %s2411_s14, 3  ;;  %s2413_s18 = smov [#allocation5]  }
   0xb   : > { %s2990_s15 = scalar_select %p2496_p1, 1, 0 }
   0xc   : > { %p2504_p4 = por %p2496_p1, %p46_p0  ;;  %p2508_p5 = pnand %p1756_p2, %p251_p3 }
   0xd   : > { %s263_s19 = sshll.u32 %s2413_s18, 4  ;;  %s2414_s21 = smov [#allocation7]   ;;  %s2512_s19 = int_to_ptr.vmem [resolvable:$true] %s263_s19 }
   0xe   : > { %s2991_s16 = scalar_select %p2504_p4, 1, 0 }
   0xf   : > { %s2992_s17 = scalar_select %p2508_p5, 1, 0 }
  0x10   : > { %p2115_p6 = pneg %p2508_p5  ;;  %s279_s22 = sshll.u32 %s2414_s21, 4  ;;  %s2522_s22 = int_to_ptr.vmem [resolvable:$true] %s279_s22 }
  0x11   : > { %s2415_s23 = smov [#allocation8]   ;;  %s2255_s27 = scalar_lea.hbm %s2976_s1, 2048 }
  0x12   : > { %p2518_p7 = pnand %p2115_p6, %p2496_p1  ;;  %s2524_s24 = sshll.u32 %s2415_s23, 4  ;;  %s296_s24 = int_to_ptr.vmem [resolvable:$true] %s2524_s24 }
  0x13   : > { %p2256_p8 = scmp.ne.s32.totalorder %s2976_s1, %s2255_s27  ;;  %p2262_p12 = scmp.lt.u32.totalorder %s2255_s27, %s2976_s1 }
  0x14   : > { %p2534_p9 = pneg %p2518_p7 }
  0x16   : > { %p2258_p10 = pnand %p2534_p9, %p2256_p8 }
  0x18   : > { %p2259_p11 = pneg %p2258_p10 }
  0x1a   : > { %p2264_p13 = pnand %p2262_p12, %p2259_p11 }
  0x1c   : > { %2267 = shalt.err (!%p2264_p13)
}
  0x1d   : > { %s2268_s18 = scalar_lea.vmem %s2512_s19, 2048  ;;  %p2276_p6 = scmp.lt.s32.totalorder %s2512_s19, %s2512_s19 }
  0x1e   : > { %p2269_p0 = scmp.ne.s32.totalorder %s2512_s19, %s2268_s18  ;;  %p2277_p1 = scmp.lt.s32.totalorder %s2268_s18, %s2268_s18 }
  0x20   : > { %p2271_p2 = pnand %p2269_p0, %p2534_p9  ;;  %p2278_p8 = por %p2277_p1, %p2276_p6 }
  0x22   : > { %p2272_p3 = pneg %p2271_p2 }
  0x24   : > { %p2279_p10 = pnand %p2278_p8, %p2272_p3 }
  0x26   : > { %2282 = shalt.err (!%p2279_p10)
}
  0x27   : > { %s2416_s21 = smov 64   ;;  %s2417_s23 = smov 4  }
  0x28   : > { %2118 = dma.hbm_to_vmem [thread:$0]  (!%p2518_p7), %s2976_s1, 2048, %s2512_s19, [#allocation6], %s2416_s21, %s2416_s21, %s2417_s23  }
  0x29   : > { %s2283_s29 = scalar_lea.hbm %s2978_s3, 1024 }
  0x2a   : > { %p2284_p1 = scmp.ne.s32.totalorder %s2978_s3, %s2283_s29  ;;  %p2290_p13 = scmp.lt.u32.totalorder %s2283_s29, %s2978_s3 }
  0x2c   : > { %p2286_p11 = pnand %p2284_p1, %p2534_p9 }
  0x2e   : > { %p2287_p12 = pneg %p2286_p11 }
  0x30   : > { %p2292_p0 = pnand %p2290_p13, %p2287_p12 }
  0x32   : > { %2295 = shalt.err (!%p2292_p0)
}
  0x33   : > { %s2296_s19 = scalar_lea.vmem %s2522_s22, 1024  ;;  %p2304_p8 = scmp.lt.s32.totalorder %s2522_s22, %s2522_s22 }
  0x34   : > { %p2297_p2 = scmp.ne.s32.totalorder %s2522_s22, %s2296_s19  ;;  %p2305_p10 = scmp.lt.s32.totalorder %s2296_s19, %s2296_s19 }
  0x36   : > { %p2299_p3 = pnand %p2297_p2, %p2534_p9  ;;  %p2306_p1 = por %p2305_p10, %p2304_p8 }
  0x38   : > { %p2300_p6 = pneg %p2299_p3 }
  0x3a   : > { %p2307_p11 = pnand %p2306_p1, %p2300_p6 }
  0x3c   : > { %2310 = shalt.err (!%p2307_p11)
}
  0x3d   : > { %2121 = dma.hbm_to_vmem [thread:$0]  (!%p2518_p7), %s2978_s3, 1024, %s2522_s22, [#allocation6], %s2416_s21, %s2416_s21, %s2417_s23  }
  0x3e   : > { %s2311_s28 = scalar_lea.hbm %s2980_s5, 1024 }
  0x3f   : > { %p2312_p12 = scmp.ne.s32.totalorder %s2980_s5, %s2311_s28  ;;  %p2318_p2 = scmp.lt.u32.totalorder %s2311_s28, %s2980_s5 }
  0x41   : > { %p2314_p13 = pnand %p2312_p12, %p2534_p9 }
  0x43   : > { %p2315_p0 = pneg %p2314_p13 }
  0x45   : > { %p2320_p3 = pnand %p2318_p2, %p2315_p0 }
  0x47   : > { %2323 = shalt.err (!%p2320_p3)
}
  0x48   : > { %s2324_s19 = scalar_lea.vmem %s296_s24, 1024  ;;  %p2332_p1 = scmp.lt.s32.totalorder %s296_s24, %s296_s24 }
  0x49   : > { %p2325_p6 = scmp.ne.s32.totalorder %s296_s24, %s2324_s19  ;;  %p2333_p11 = scmp.lt.s32.totalorder %s2324_s19, %s2324_s19 }
  0x4b   : > { %p2327_p8 = pnand %p2325_p6, %p2534_p9  ;;  %p2334_p4 = por %p2333_p11, %p2332_p1 }
  0x4d   : > { %p2328_p10 = pneg %p2327_p8 }
  0x4f   : > { %p2335_p5 = pnand %p2334_p4, %p2328_p10 }
  0x51   : > { %2338 = shalt.err (!%p2335_p5)
}
  0x52   : > { %2124 = dma.hbm_to_vmem [thread:$0]  (!%p2518_p7), %s2980_s5, 1024, %s296_s24, [#allocation9], %s2416_s21, %s2416_s21, %s2417_s23  }
  0x53   : > { %s2607_s30 = sadd.s32 1, %s2411_s14   ;;  %s33_s25 = sadd.s32 1, %s2407_s13 }
  0x54   : > { %s30_s20 = ssub.s32 %s2411_s14, %s2607_s30  ;;  %p40_p5 = scmp.ne.s32.totalorder %s2407_s13, %s2403_s12 }
  0x55   : > { %p31_p4 = scmp.eq.s32.totalorder %s30_s20, 0  ;;  %p41_p9 = scmp.eq.s32.totalorder %s2411_s14, 0 }
  0x56   : > { %p2132_p12 = scmp.lt.s32.totalorder %s2411_s14, 2  ;;  %s318_s27 = sand.u32 1, %s2407_s13  }
  0x57   : > { %s2617_s26 = scalar_select %p31_p4, %s2407_s13, %s33_s25  }
  0x58   : > { %p42_p13 = por %p41_p9, %p40_p5  ;;  %s1761_s28 = sshll.u32 %s318_s27, 8 }
  0x59   : > { %s1844_s29 = sshll.u32 %s2411_s14, 12  ;;  %s322_s24 = scalar_lea.vmem [#allocation3], %s1761_s28 }
  0x5a   : > { %s2624_s18 = scalar_lea.hbm %s2975_s0, %s1844_s29  ;;  %s330_s21 = sshll.u32 %s322_s24, 4  ;;  %s2626_s21 = int_to_ptr.vmem [resolvable:$true] %s330_s21 }
  0x5b   : > { %p2628_p7 = pnand %p2132_p12, %p42_p13  ;;  %s2632_s19 = scalar_lea.sflag [#allocation4], %s318_s27 }
  0x5c   : > { %s2339_s22 = scalar_lea.hbm %s2624_s18, 4096  ;;  %s2344_s25 = scalar_lea.hbm %s2975_s0, 8192 }
  0x5d   : > { %p2340_p0 = scmp.ne.s32.totalorder %s2624_s18, %s2339_s22  ;;  %p2341_p2 = pneg %p2628_p7 }
  0x5e   : > { %p2345_p8 = scmp.lt.u32.totalorder %s2624_s18, %s2975_s0  ;;  %p2346_p10 = scmp.lt.u32.totalorder %s2344_s25, %s2339_s22 }
  0x5f   : > { %p2342_p3 = pnand %p2341_p2, %p2340_p0  ;;  %p2348_p11 = scmp.lt.u32.totalorder %s2339_s22, %s2624_s18 }
  0x60   : > { %p2347_p1 = por %p2346_p10, %p2345_p8 }
  0x61   : > { %p2343_p6 = pneg %p2342_p3 }
  0x62   : > { %p2349_p4 = por %p2348_p11, %p2347_p1 }
  0x64   : > { %p2350_p5 = pnand %p2349_p4, %p2343_p6 }
  0x66   : > { %2353 = shalt.err (!%p2350_p5)
}
  0x67   : > { %s2354_s27 = scalar_lea.vmem %s2626_s21, 4096  ;;  %s2418_s10 = smov [#allocation3]  }
  0x68   : > { %p2355_p9 = scmp.ne.s32.totalorder %s2626_s21, %s2354_s27  ;;  %s2359_s11 = sshll.u32 %s2418_s10, 4  ;;  %s2360_s11 = int_to_ptr.vmem [resolvable:$false] %s2359_s11 }
  0x69   : > { %s2361_s24 = scalar_lea.vmem %s2360_s11, 8192  ;;  %p2362_p0 = scmp.lt.s32.totalorder %s2626_s21, %s2360_s11 }
  0x6a   : > { %p2357_p12 = pnand %p2355_p9, %p2341_p2  ;;  %p2363_p3 = scmp.lt.s32.totalorder %s2361_s24, %s2354_s27 }
  0x6c   : > { %p2358_p13 = pneg %p2357_p12  ;;  %p2364_p8 = por %p2363_p3, %p2362_p0 }
  0x6e   : > { %p2365_p10 = pnand %p2364_p8, %p2358_p13 }
  0x70   : > { %2368 = shalt.err (!%p2365_p10)
}
  0x71   : > { %s2419_s22 = smov 128   ;;  %s2420_s8 = smov 8  }
  0x72   : > { %2128 = dma.hbm_to_vmem [thread:$0]  (!%p2628_p7), %s2624_s18, 4096, %s2626_s21, %s2632_s19, %s2419_s22, %s2419_s22, %s2420_s8  }
  0x73   : > { %p2996_p2 = scmp.ne.s32.totalorder %s2992_s17, 0 }
  0x74   : > { %s344_s20 = sand.u32 (!%p2996_p2), 1, %s2403_s12   ;;  %p2997_p6 = scmp.ne.s32.totalorder (!%p2996_p2), %s2991_s16, 0 }
  0x75   : > { %342 = sbr.rel (%p2996_p2) target bundleno = 1098 (0x44a), region = 56  ;;  %s1766_s25 = sshll.u32 (!%p2996_p2), %s344_s20, 8 }
  0x76   : > { %s345_s28 = scalar_lea.sflag (!%p2996_p2), [#allocation4], %s344_s20  ;;  %s2663_s29 = scalar_lea.vmem (!%p2996_p2), [#allocation3], %s1766_s25 }
  0x7c   : > { %2386 = dma.done.wait (%p2997_p6), %s345_s28, 4096  }
  0x7d   : > { %2388 = vsyncadd (%p2997_p6), %s345_s28, 4294963200  ;;  %p2998_p1 = scmp.ne.s32.totalorder %s2990_s15, 0 }
  0x7f   : > { %2390 = dma.done.wait (%p2998_p1), [#allocation6], 3072  }
  0x80   : > { %2392 = vsyncadd (%p2998_p1), [#allocation6], 4294964224 }
  0x81   : > { %2394 = dma.done.wait (%p2998_p1), [#allocation9], 1024  }
  0x82   : > { %2396 = vsyncadd (%p2998_p1), [#allocation9], 4294966272  ;;  %v2175_v1 = vld [vmem:[#allocation5 + $0x40] sm:$0xff]   ;;  %v2177_v3 = vld [vmem:[#allocation5 + $0x48] sm:$0xff]   ;;  %s2999_s10 = sadd.s32 4294967295, %s2411_s14   ;;  %vm1625_vm0 = vcmask 7168  }
  0x83   : > { %v2176_v2 = vld [vmem:[#allocation5] sm:$0xff]   ;;  %1845 = vmatprep.subr.bf16.mxu0 %v2175_v1  ;;  %v2178_v4 = vld [vmem:[#allocation5 + $0x8] sm:$0xff]   ;;  %v2179_v5 = vld [vmem:[#allocation5 + $0x50] sm:$0xff]   ;;  %s1770_s11 = sshll.u32 %s2999_s10, 5 }
  0x84   : > { %1846 = vmatpush3.bf16.msra.mxu0 %v2176_v2  ;;  %v2180_v6 = vld [vmem:[#allocation5 + $0x10] sm:$0xff]   ;;  %v2181_v7 = vld [vmem:[#allocation5 + $0x58] sm:$0xff]   ;;  %v2183_v9 = vld [vmem:[#allocation5 + $0x60] sm:$0xff]   ;;  %p397_p7 = scmp.lt.s32.totalorder %s1770_s11, 63 }
  0x85   : > { %1847 = vmatprep.subr.bf16.mxu0 %v2177_v3  ;;  %v2182_v8 = vld [vmem:[#allocation5 + $0x18] sm:$0xff]   ;;  %v2184_v10 = vld [vmem:[#allocation5 + $0x20] sm:$0xff]   ;;  %v2185_v11 = vld [vmem:[#allocation5 + $0x68] sm:$0xff]  }
  0x86   : > { %v2193_v12 = vld [vmem:[%s2663_s29 + $0x4] ss:$8 sps:$4 sm:$0xff]   ;;  %v2187_v14 = vld [vmem:[#allocation5 + $0x70] sm:$0xff]   ;;  %v2189_v16 = vld [vmem:[#allocation5 + $0x78] sm:$0xff]   ;;  %s3005_s11 = smov (!%p397_p7, %s1770_s11), 63 }
  0x87   : > { %v2186_v13 = vld [vmem:[#allocation5 + $0x28] sm:$0xff]   ;;  %762 = vmatprep.mubr.bf16.mxu0 %v2193_v12  ;;  %v2188_v15 = vld [vmem:[#allocation5 + $0x30] sm:$0xff]   ;;  %v2190_v17 = vld [vmem:[#allocation5 + $0x38] sm:$0xff]   ;;  %s1771_s24 = sshll.u32 %s3005_s11, 3 }
  0x88   : > { %1848 = vmatpush3.bf16.msra.mxu0 %v2178_v4  ;;  %v2191_v18 = vld [vmem:[%s2663_s29] ss:$8 sps:$4 sm:$0xff]   ;;  %v2194_v19 = vld [vmem:[%s2663_s29 + $0x14] ss:$8 sps:$4 sm:$0xff]   ;;  %v2196_v20 = vld [vmem:[%s2663_s29 + $0x10] ss:$8 sps:$4 sm:$0xff]   ;;  %s2864_s20 = scalar_lea.vmem %s2984_s9, %s1771_s24 }
  0x89   : > { %1849 = vmatprep.subr.bf16.mxu0 %v2179_v5  ;;  %v2197_v21 = vld [vmem:[%s2663_s29 + $0x24] ss:$8 sps:$4 sm:$0xff]   ;;  %v2241_v24 = vld [vmem:[#allocation7 + $0x10] sm:$0xff]   ;;  %v2199_v25 = vld [vmem:[%s2663_s29 + $0x20] ss:$8 sps:$4 sm:$0xff]  }
  0x8a   : > { %v2239_v22 = vld [vmem:[#allocation7] sm:$0xff]   ;;  %v2240_v23 = vld [vmem:[#allocation7 + $0x8] sm:$0xff]   ;;  %v2200_v26 = vld [vmem:[%s2663_s29 + $0x34] ss:$8 sps:$4 sm:$0xff]  }
  0x8b   : > { %2005 = vmatprep.subr.bf16.mxu1 %v2239_v22  ;;  %v2202_v27 = vld [vmem:[%s2663_s29 + $0x30] ss:$8 sps:$4 sm:$0xff]   ;;  %v2203_v28 = vld [vmem:[%s2663_s29 + $0x44] ss:$8 sps:$4 sm:$0xff]   ;;  %v2205_v29 = vld [vmem:[%s2663_s29 + $0x40] ss:$8 sps:$4 sm:$0xff]  }
  0x8c   : > { %1850 = vmatpush3.bf16.msra.mxu0 %v2180_v6  ;;  %2006 = vmatpush3.bf16.msra.mxu1 %v2239_v22  ;;  %v2206_v30 = vld [vmem:[%s2663_s29 + $0x54] ss:$8 sps:$4 sm:$0xff]   ;;  %v2208_v31 = vld [vmem:[%s2663_s29 + $0x50] ss:$8 sps:$4 sm:$0xff]   ;;  %v2209_v32 = vld [vmem:[%s2663_s29 + $0x64] ss:$8 sps:$4 sm:$0xff]  }
  0x8d   : > { %1851 = vmatprep.subr.bf16.mxu0 %v2181_v7  ;;  %2007 = vmatprep.subr.bf16.mxu1 %v2240_v23  ;;  %v2211_v33 = vld [vmem:[%s2663_s29 + $0x60] ss:$8 sps:$4 sm:$0xff]   ;;  %v2212_v34 = vld [vmem:[%s2663_s29 + $0x74] ss:$8 sps:$4 sm:$0xff]   ;;  %v2214_v35 = vld [vmem:[%s2663_s29 + $0x70] ss:$8 sps:$4 sm:$0xff]  }
  0x8e   : > { %v2215_v36 = vld [vmem:[%s2663_s29 + $0x84] ss:$8 sps:$4 sm:$0xff]   ;;  %v2217_v37 = vld [vmem:[%s2663_s29 + $0x80] ss:$8 sps:$4 sm:$0xff]   ;;  %v2218_v38 = vld [vmem:[%s2663_s29 + $0x94] ss:$8 sps:$4 sm:$0xff]  }
  0x8f   : > { %v2220_v39 = vld [vmem:[%s2663_s29 + $0x90] ss:$8 sps:$4 sm:$0xff]   ;;  %v2221_v40 = vld [vmem:[%s2663_s29 + $0xa4] ss:$8 sps:$4 sm:$0xff]   ;;  %v2223_v41 = vld [vmem:[%s2663_s29 + $0xa0] ss:$8 sps:$4 sm:$0xff]  }
  0x90   : > { %1852 = vmatpush3.bf16.msra.mxu0 %v2182_v8  ;;  %2008 = vmatpush3.bf16.msra.mxu1 %v2240_v23  ;;  %v2224_v42 = vld [vmem:[%s2663_s29 + $0xb4] ss:$8 sps:$4 sm:$0xff]   ;;  %v2226_v44 = vld [vmem:[%s2663_s29 + $0xb0] ss:$8 sps:$4 sm:$0xff]   ;;  %v2227_v45 = vld [vmem:[%s2663_s29 + $0xc4] ss:$8 sps:$4 sm:$0xff]  }
  0x91   : > { %1853 = vmatprep.subr.bf16.mxu0 %v2183_v9  ;;  %2009 = vmatprep.subr.bf16.mxu1 %v2241_v24  ;;  %v2242_v43 = vld [vmem:[#allocation7 + $0x18] sm:$0xff]   ;;  %v2243_v46 = vld [vmem:[#allocation7 + $0x20] sm:$0xff]   ;;  %v2244_v47 = vld [vmem:[#allocation7 + $0x28] sm:$0xff]  }
  0x92   : > { %v2229_v48 = vld [vmem:[%s2663_s29 + $0xc0] ss:$8 sps:$4 sm:$0xff]   ;;  %v2230_v49 = vld [vmem:[%s2663_s29 + $0xd4] ss:$8 sps:$4 sm:$0xff]   ;;  %v2232_v52 = vld [vmem:[%s2663_s29 + $0xd0] ss:$8 sps:$4 sm:$0xff]  }
  0x93   : > { %v2245_v50 = vld [vmem:[#allocation7 + $0x30] sm:$0xff]   ;;  %v2246_v51 = vld [vmem:[#allocation7 + $0x38] sm:$0xff]   ;;  %v2233_v53 = vld [vmem:[%s2663_s29 + $0xe4] ss:$8 sps:$4 sm:$0xff]  }
  0x94   : > { %1854 = vmatpush3.bf16.msra.mxu0 %v2184_v10  ;;  %2010 = vmatpush3.bf16.msra.mxu1 %v2241_v24  ;;  %v2235_v54 = vld [vmem:[%s2663_s29 + $0xe0] ss:$8 sps:$4 sm:$0xff]   ;;  %v2236_v55 = vld [vmem:[%s2663_s29 + $0xf4] ss:$8 sps:$4 sm:$0xff]   ;;  %v2238_v56 = vld [vmem:[%s2663_s29 + $0xf0] ss:$8 sps:$4 sm:$0xff]  }
  0x95   : > { %1855 = vmatprep.subr.bf16.mxu0 %v2185_v11  ;;  %2011 = vmatprep.subr.bf16.mxu1 %v2242_v43  ;;  %v2712_v59 = vld [vmem:[%s2977_s2] ss:$0 sm:$0xff]  ;;  %v2247_v1 = vld [vmem:[#allocation8] sm:$0xff]  }
  0x98   : > { %1856 = vmatpush3.bf16.msra.mxu0 %v2186_v13  ;;  %2012 = vmatpush3.bf16.msra.mxu1 %v2242_v43 }
  0x99   : > { %1857 = vmatprep.subr.bf16.mxu0 %v2187_v14  ;;  %2013 = vmatprep.subr.bf16.mxu1 %v2243_v46 }
  0x9c   : > { %1858 = vmatpush3.bf16.msra.mxu0 %v2188_v15  ;;  %2014 = vmatpush3.bf16.msra.mxu1 %v2243_v46 }
  0x9d   : > { %1859 = vmatprep.subr.bf16.mxu0 %v2189_v16  ;;  %2015 = vmatprep.subr.bf16.mxu1 %v2244_v47 }
  0xa0   : > { %1860 = vmatpush3.bf16.msra.mxu0 %v2190_v17  ;;  %2016 = vmatpush3.bf16.msra.mxu1 %v2244_v47  ;;  %v2252_v47 = vld [vmem:[#allocation8 + $0x28] sm:$0xff]  }
  0xa1   : > { %2017 = vmatprep.subr.bf16.mxu1 %v2245_v50 }
  0xa3   : > { %763 = vmatmul.mubr.bf16.vlgmr.msra.gmra.mrb[0].mxu0 %v2191_v18 }
  0xa4   : > { %770 = vmatprep.mubr.bf16.mxu0 %v2194_v19  ;;  %2018 = vmatpush3.bf16.msra.mxu1 %v2245_v50 }
  0xa5   : > { %2019 = vmatprep.subr.bf16.mxu1 %v2246_v51 }
  0xa8   : > { %2020 = vmatpush3.bf16.msra.mxu1 %v2246_v51 }
  0xa9   : > { %2053 = vmatprep.subr.bf16.mxu1 %v2247_v1 }
  0xab   : > { %771 = vmatmul.mubr.bf16.gmra.mrb[4].mxu0 %v2196_v20 }
  0xac   : > { %778 = vmatprep.mubr.bf16.mxu0 %v2197_v21  ;;  %v2248_v21 = vld [vmem:[#allocation8 + $0x8] sm:$0xff]  }
  0xb3   : > { %779 = vmatmul.mubr.bf16.gmra.mrb[8].mxu0 %v2199_v25 }
  0xb4   : > { %786 = vmatprep.mubr.bf16.mxu0 %v2200_v26  ;;  %v2249_v26 = vld [vmem:[#allocation8 + $0x10] sm:$0xff]  }
  0xbb   : > { %787 = vmatmul.mubr.bf16.gmra.mrb[12].mxu0 %v2202_v27 }
  0xbc   : > { %794 = vmatprep.mubr.bf16.mxu0 %v2203_v28 }
  0xc3   : > { %795 = vmatmul.mubr.bf16.gmra.mrb[16].mxu0 %v2205_v29 }
  0xc4   : > { %802 = vmatprep.mubr.bf16.mxu0 %v2206_v30 }
  0xcb   : > { %803 = vmatmul.mubr.bf16.gmra.mrb[20].mxu0 %v2208_v31 }
  0xcc   : > { %810 = vmatprep.mubr.bf16.mxu0 %v2209_v32 }
  0xd3   : > { %811 = vmatmul.mubr.bf16.gmra.mrb[24].mxu0 %v2211_v33 }
  0xd4   : > { %818 = vmatprep.mubr.bf16.mxu0 %v2212_v34  ;;  %v2250_v34 = vld [vmem:[#allocation8 + $0x18] sm:$0xff]  }
  0xdb   : > { %819 = vmatmul.mubr.bf16.gmra.mrb[28].mxu0 %v2214_v35 }
  0xdc   : > { %826 = vmatprep.mubr.bf16.mxu0 %v2215_v36 }
  0xe3   : > { %827 = vmatmul.mubr.bf16.gmra.mrb[32].mxu0 %v2217_v37 }
  0xe4   : > { %834 = vmatprep.mubr.bf16.mxu0 %v2218_v38 }
  0xeb   : > { %835 = vmatmul.mubr.bf16.gmra.mrb[36].mxu0 %v2220_v39  ;;  %v2251_v39 = vld [vmem:[#allocation8 + $0x20] sm:$0xff]  }
  0xec   : > { %842 = vmatprep.mubr.bf16.mxu0 %v2221_v40 }
  0xf3   : > { %843 = vmatmul.mubr.bf16.gmra.mrb[40].mxu0 %v2223_v41 }
  0xf4   : > { %850 = vmatprep.mubr.bf16.mxu0 %v2224_v42 }
  0xfb   : > { %851 = vmatmul.mubr.bf16.gmra.mrb[44].mxu0 %v2226_v44 }
  0xfc   : > { %858 = vmatprep.mubr.bf16.mxu0 %v2227_v45 }
 0x103   : > { %859 = vmatmul.mubr.bf16.gmra.mrb[48].mxu0 %v2229_v48 }
 0x104   : > { %866 = vmatprep.mubr.bf16.mxu0 %v2230_v49 }
 0x10b   : > { %867 = vmatmul.mubr.bf16.gmra.mrb[52].mxu0 %v2232_v52 }
 0x10c   : > { %874 = vmatprep.mubr.bf16.mxu0 %v2233_v53 }
 0x113   : > { %875 = vmatmul.mubr.bf16.gmra.mrb[56].mxu0 %v2235_v54 }
 0x114   : > { %882 = vmatprep.mubr.bf16.mxu0 %v2236_v55 }
 0x11b   : > { %883 = vmatmul.mubr.bf16.gmra.mrb[60].mxu0 %v2238_v56 }
 0x176   : > { %v1861_v57 = vpop.f32.mrb[0].mxu0 }
 0x177   : > { %v1862_v58 = vpop.f32.mrb[1].mxu0 }
 0x178   : > { %v1863_v60 = vadd.f32 %v1862_v58, %v1861_v57  ;;  %v1864_v61 = vpop.f32.mrb[2].mxu0 }
 0x179   : > { %v1865_v62 = vpop.f32.mrb[3].mxu0 }
 0x17a   : > { %v1866_v63 = vadd.f32 %v1865_v62, %v1864_v61  ;;  %v765_v0 = vadd.f32 %v1863_v60, %v2712_v59 }
 0x17c   : > { %v768_v2 = vadd.f32 %v1866_v63, %v2712_v59  ;;  %v891_v4 = vmax.f32 %v765_v0, 0.0 }
 0x17e   : > { %v1867_v3 = vpop.f32.mrb[4].mxu0  ;;  %v892_v5 = vmax.f32 %v768_v2, 0.0 }
 0x17f   : > { %v1868_v6 = vpop.f32.mrb[5].mxu0 }
 0x180   : > { %v1869_v7 = vadd.f32 %v1868_v6, %v1867_v3  ;;  %v1870_v8 = vpop.f32.mrb[6].mxu0  ;;  %v923_v9 = vpack.c.bf16 %v892_v5, %v891_v4 }
 0x181   : > { %v1871_v10 = vpop.f32.mrb[7].mxu0 }
 0x182   : > { %v773_v11 = vadd.f32 %v1869_v7, %v2712_v59  ;;  %v1872_v12 = vadd.f32 %v1871_v10, %v1870_v8  ;;  %2021 = vmatprep.mubr.bf16.mxu1 %v923_v9 }
 0x184   : > { %v776_v13 = vadd.f32 %v1872_v12, %v2712_v59  ;;  %v893_v14 = vmax.f32 %v773_v11, 0.0 }
 0x186   : > { %v894_v15 = vmax.f32 %v776_v13, 0.0  ;;  %v1873_v16 = vpop.f32.mrb[8].mxu0 }
 0x187   : > { %v1874_v17 = vpop.f32.mrb[9].mxu0 }
 0x188   : > { %v1875_v18 = vadd.f32 %v1874_v17, %v1873_v16  ;;  %v1876_v19 = vpop.f32.mrb[10].mxu0  ;;  %v924_v20 = vpack.c.bf16 %v894_v15, %v893_v14 }
 0x189   : > { %v1877_v22 = vpop.f32.mrb[11].mxu0 }
 0x18a   : > { %v781_v23 = vadd.f32 %v1875_v18, %v2712_v59  ;;  %v1878_v24 = vadd.f32 %v1877_v22, %v1876_v19  ;;  %2022 = vmatmul.mubr.bf16.vlgmr.msra.gmra.mrb[0].mxu1 %v924_v20 }
 0x18b   : > { %2054 = vmatpush3.bf16.msra.mxu1 %v2247_v1 }
 0x18c   : > { %v784_v25 = vadd.f32 %v1878_v24, %v2712_v59  ;;  %2055 = vmatprep.subr.bf16.mxu1 %v2248_v21  ;;  %v895_v27 = vmax.f32 %v781_v23, 0.0 }
 0x18e   : > { %v896_v28 = vmax.f32 %v784_v25, 0.0  ;;  %v1879_v29 = vpop.f32.mrb[12].mxu0 }
 0x18f   : > { %v1880_v30 = vpop.f32.mrb[13].mxu0  ;;  %2056 = vmatpush3.bf16.msra.mxu1 %v2248_v21 }
 0x190   : > { %v1881_v31 = vadd.f32 %v1880_v30, %v1879_v29  ;;  %v1882_v32 = vpop.f32.mrb[14].mxu0  ;;  %v925_v33 = vpack.c.bf16 %v896_v28, %v895_v27  ;;  %2057 = vmatprep.subr.bf16.mxu1 %v2249_v26 }
 0x191   : > { %v1883_v35 = vpop.f32.mrb[15].mxu0 }
 0x192   : > { %v789_v36 = vadd.f32 %v1881_v31, %v2712_v59  ;;  %v1884_v37 = vadd.f32 %v1883_v35, %v1882_v32  ;;  %2025 = vmatprep.mubr.bf16.mxu1 %v925_v33 }
 0x193   : > { %2058 = vmatpush3.bf16.msra.mxu1 %v2249_v26 }
 0x194   : > { %v792_v38 = vadd.f32 %v1884_v37, %v2712_v59  ;;  %2059 = vmatprep.subr.bf16.mxu1 %v2250_v34  ;;  %v897_v40 = vmax.f32 %v789_v36, 0.0 }
 0x196   : > { %v898_v41 = vmax.f32 %v792_v38, 0.0  ;;  %v1885_v42 = vpop.f32.mrb[16].mxu0 }
 0x197   : > { %v1886_v43 = vpop.f32.mrb[17].mxu0  ;;  %2060 = vmatpush3.bf16.msra.mxu1 %v2250_v34 }
 0x198   : > { %v1887_v44 = vadd.f32 %v1886_v43, %v1885_v42  ;;  %v1888_v45 = vpop.f32.mrb[18].mxu0  ;;  %v926_v46 = vpack.c.bf16 %v898_v41, %v897_v40  ;;  %2061 = vmatprep.subr.bf16.mxu1 %v2251_v39 }
 0x199   : > { %v1889_v48 = vpop.f32.mrb[19].mxu0 }
 0x19a   : > { %v797_v49 = vadd.f32 %v1887_v44, %v2712_v59  ;;  %v1890_v50 = vadd.f32 %v1889_v48, %v1888_v45  ;;  %2026 = vmatmul.mubr.bf16.gmra.mrb[4].mxu1 %v926_v46 }
 0x19b   : > { %2062 = vmatpush3.bf16.msra.mxu1 %v2251_v39 }
 0x19c   : > { %v800_v51 = vadd.f32 %v1890_v50, %v2712_v59  ;;  %2063 = vmatprep.subr.bf16.mxu1 %v2252_v47  ;;  %v899_v52 = vmax.f32 %v797_v49, 0.0 }
 0x19e   : > { %v900_v53 = vmax.f32 %v800_v51, 0.0  ;;  %v1891_v54 = vpop.f32.mrb[20].mxu0 }
 0x19f   : > { %v1892_v55 = vpop.f32.mrb[21].mxu0  ;;  %2064 = vmatpush3.bf16.msra.mxu1 %v2252_v47 }
 0x1a0   : > { %v1893_v56 = vadd.f32 %v1892_v55, %v1891_v54  ;;  %v1894_v57 = vpop.f32.mrb[22].mxu0  ;;  %v927_v58 = vpack.c.bf16 %v900_v53, %v899_v52 }
 0x1a1   : > { %v1895_v60 = vpop.f32.mrb[23].mxu0 }
 0x1a2   : > { %v805_v61 = vadd.f32 %v1893_v56, %v2712_v59  ;;  %v1896_v62 = vadd.f32 %v1895_v60, %v1894_v57  ;;  %2029 = vmatprep.mubr.bf16.mxu1 %v927_v58 }
 0x1a4   : > { %v808_v63 = vadd.f32 %v1896_v62, %v2712_v59  ;;  %v901_v0 = vmax.f32 %v805_v61, 0.0 }
 0x1a6   : > { %v902_v1 = vmax.f32 %v808_v63, 0.0  ;;  %v1897_v2 = vpop.f32.mrb[24].mxu0 }
 0x1a7   : > { %v1898_v3 = vpop.f32.mrb[25].mxu0 }
 0x1a8   : > { %v1899_v4 = vadd.f32 %v1898_v3, %v1897_v2  ;;  %v1900_v5 = vpop.f32.mrb[26].mxu0  ;;  %v928_v6 = vpack.c.bf16 %v902_v1, %v901_v0 }
 0x1a9   : > { %v1901_v7 = vpop.f32.mrb[27].mxu0 }
 0x1aa   : > { %v813_v8 = vadd.f32 %v1899_v4, %v2712_v59  ;;  %v1902_v9 = vadd.f32 %v1901_v7, %v1900_v5  ;;  %2030 = vmatmul.mubr.bf16.gmra.mrb[8].mxu1 %v928_v6 }
 0x1ac   : > { %v816_v10 = vadd.f32 %v1902_v9, %v2712_v59  ;;  %v903_v11 = vmax.f32 %v813_v8, 0.0 }
 0x1ae   : > { %v904_v12 = vmax.f32 %v816_v10, 0.0  ;;  %v1903_v13 = vpop.f32.mrb[28].mxu0 }
 0x1af   : > { %v1904_v14 = vpop.f32.mrb[29].mxu0 }
 0x1b0   : > { %v1905_v15 = vadd.f32 %v1904_v14, %v1903_v13  ;;  %v1906_v16 = vpop.f32.mrb[30].mxu0  ;;  %v929_v17 = vpack.c.bf16 %v904_v12, %v903_v11 }
 0x1b1   : > { %v1907_v18 = vpop.f32.mrb[31].mxu0 }
 0x1b2   : > { %v821_v19 = vadd.f32 %v1905_v15, %v2712_v59  ;;  %v1908_v20 = vadd.f32 %v1907_v18, %v1906_v16  ;;  %2033 = vmatprep.mubr.bf16.mxu1 %v929_v17  ;;  %v2253_v17 = vld [vmem:[#allocation8 + $0x30] sm:$0xff]  }
 0x1b3   : > { %2065 = vmatprep.subr.bf16.mxu1 %v2253_v17 }
 0x1b4   : > { %v824_v21 = vadd.f32 %v1908_v20, %v2712_v59  ;;  %v905_v22 = vmax.f32 %v821_v19, 0.0  ;;  %2066 = vmatpush3.bf16.msra.mxu1 %v2253_v17 }
 0x1b6   : > { %v906_v23 = vmax.f32 %v824_v21, 0.0  ;;  %v1909_v24 = vpop.f32.mrb[32].mxu0 }
 0x1b7   : > { %v1910_v25 = vpop.f32.mrb[33].mxu0 }
 0x1b8   : > { %v1911_v26 = vadd.f32 %v1910_v25, %v1909_v24  ;;  %v1912_v27 = vpop.f32.mrb[34].mxu0  ;;  %v930_v28 = vpack.c.bf16 %v906_v23, %v905_v22  ;;  %v2254_v25 = vld [vmem:[#allocation8 + $0x38] sm:$0xff]  }
 0x1b9   : > { %v1913_v29 = vpop.f32.mrb[35].mxu0  ;;  %2067 = vmatprep.subr.bf16.mxu1 %v2254_v25 }
 0x1ba   : > { %v829_v30 = vadd.f32 %v1911_v26, %v2712_v59  ;;  %v1914_v31 = vadd.f32 %v1913_v29, %v1912_v27  ;;  %2034 = vmatmul.mubr.bf16.gmra.mrb[12].mxu1 %v930_v28 }
 0x1bb   : > { %2068 = vmatpush3.bf16.msra.mxu1 %v2254_v25 }
 0x1bc   : > { %v832_v32 = vadd.f32 %v1914_v31, %v2712_v59  ;;  %v907_v33 = vmax.f32 %v829_v30, 0.0 }
 0x1be   : > { %v908_v34 = vmax.f32 %v832_v32, 0.0  ;;  %v1915_v35 = vpop.f32.mrb[36].mxu0 }
 0x1bf   : > { %v1916_v36 = vpop.f32.mrb[37].mxu0 }
 0x1c0   : > { %v1917_v37 = vadd.f32 %v1916_v36, %v1915_v35  ;;  %v1918_v38 = vpop.f32.mrb[38].mxu0  ;;  %v931_v39 = vpack.c.bf16 %v908_v34, %v907_v33 }
 0x1c1   : > { %v1919_v40 = vpop.f32.mrb[39].mxu0 }
 0x1c2   : > { %v837_v41 = vadd.f32 %v1917_v37, %v2712_v59  ;;  %v1920_v42 = vadd.f32 %v1919_v40, %v1918_v38  ;;  %2037 = vmatprep.mubr.bf16.mxu1 %v931_v39 }
 0x1c4   : > { %v840_v43 = vadd.f32 %v1920_v42, %v2712_v59  ;;  %v909_v44 = vmax.f32 %v837_v41, 0.0 }
 0x1c6   : > { %v910_v45 = vmax.f32 %v840_v43, 0.0  ;;  %v1921_v46 = vpop.f32.mrb[40].mxu0 }
 0x1c7   : > { %v1922_v47 = vpop.f32.mrb[41].mxu0 }
 0x1c8   : > { %v1923_v48 = vadd.f32 %v1922_v47, %v1921_v46  ;;  %v1924_v49 = vpop.f32.mrb[42].mxu0  ;;  %v932_v50 = vpack.c.bf16 %v910_v45, %v909_v44 }
 0x1c9   : > { %v1925_v51 = vpop.f32.mrb[43].mxu0 }
 0x1ca   : > { %v845_v52 = vadd.f32 %v1923_v48, %v2712_v59  ;;  %v1926_v53 = vadd.f32 %v1925_v51, %v1924_v49  ;;  %2038 = vmatmul.mubr.bf16.gmra.mrb[16].mxu1 %v932_v50 }
 0x1cc   : > { %v848_v54 = vadd.f32 %v1926_v53, %v2712_v59  ;;  %v911_v55 = vmax.f32 %v845_v52, 0.0  ;;  %v2749_v52 = vld [vmem:[%s2979_s4] ss:$0 sm:$0xff] }
 0x1ce   : > { %v912_v56 = vmax.f32 %v848_v54, 0.0  ;;  %v1927_v57 = vpop.f32.mrb[44].mxu0 }
 0x1cf   : > { %v1928_v58 = vpop.f32.mrb[45].mxu0 }
 0x1d0   : > { %v1929_v60 = vadd.f32 %v1928_v58, %v1927_v57  ;;  %v1930_v61 = vpop.f32.mrb[46].mxu0  ;;  %v933_v62 = vpack.c.bf16 %v912_v56, %v911_v55 }
 0x1d1   : > { %v1931_v63 = vpop.f32.mrb[47].mxu0 }
 0x1d2   : > { %v853_v0 = vadd.f32 %v1929_v60, %v2712_v59  ;;  %v1932_v1 = vadd.f32 %v1931_v63, %v1930_v61  ;;  %2041 = vmatprep.mubr.bf16.mxu1 %v933_v62 }
 0x1d4   : > { %v856_v2 = vadd.f32 %v1932_v1, %v2712_v59  ;;  %v913_v3 = vmax.f32 %v853_v0, 0.0 }
 0x1d6   : > { %v914_v4 = vmax.f32 %v856_v2, 0.0  ;;  %v1933_v5 = vpop.f32.mrb[48].mxu0 }
 0x1d7   : > { %v1934_v6 = vpop.f32.mrb[49].mxu0 }
 0x1d8   : > { %v1935_v7 = vadd.f32 %v1934_v6, %v1933_v5  ;;  %v1936_v8 = vpop.f32.mrb[50].mxu0  ;;  %v934_v9 = vpack.c.bf16 %v914_v4, %v913_v3 }
 0x1d9   : > { %v1937_v10 = vpop.f32.mrb[51].mxu0 }
 0x1da   : > { %v861_v11 = vadd.f32 %v1935_v7, %v2712_v59  ;;  %v1938_v12 = vadd.f32 %v1937_v10, %v1936_v8  ;;  %2042 = vmatmul.mubr.bf16.gmra.mrb[20].mxu1 %v934_v9 }
 0x1dc   : > { %v864_v13 = vadd.f32 %v1938_v12, %v2712_v59  ;;  %v915_v14 = vmax.f32 %v861_v11, 0.0 }
 0x1de   : > { %v916_v15 = vmax.f32 %v864_v13, 0.0  ;;  %v1939_v16 = vpop.f32.mrb[52].mxu0 }
 0x1df   : > { %v1940_v18 = vpop.f32.mrb[53].mxu0 }
 0x1e0   : > { %v1941_v19 = vadd.f32 %v1940_v18, %v1939_v16  ;;  %v1942_v20 = vpop.f32.mrb[54].mxu0  ;;  %v935_v21 = vpack.c.bf16 %v916_v15, %v915_v14 }
 0x1e1   : > { %v1943_v22 = vpop.f32.mrb[55].mxu0 }
 0x1e2   : > { %v869_v23 = vadd.f32 %v1941_v19, %v2712_v59  ;;  %v1944_v24 = vadd.f32 %v1943_v22, %v1942_v20  ;;  %2045 = vmatprep.mubr.bf16.mxu1 %v935_v21 }
 0x1e4   : > { %v872_v26 = vadd.f32 %v1944_v24, %v2712_v59  ;;  %v917_v27 = vmax.f32 %v869_v23, 0.0 }
 0x1e6   : > { %v918_v28 = vmax.f32 %v872_v26, 0.0  ;;  %v1945_v29 = vpop.f32.mrb[56].mxu0 }
 0x1e7   : > { %v1946_v30 = vpop.f32.mrb[57].mxu0 }
 0x1e8   : > { %v1947_v31 = vadd.f32 %v1946_v30, %v1945_v29  ;;  %v1948_v32 = vpop.f32.mrb[58].mxu0  ;;  %v936_v33 = vpack.c.bf16 %v918_v28, %v917_v27 }
 0x1e9   : > { %v1949_v34 = vpop.f32.mrb[59].mxu0 }
 0x1ea   : > { %v877_v35 = vadd.f32 %v1947_v31, %v2712_v59  ;;  %v1950_v36 = vadd.f32 %v1949_v34, %v1948_v32  ;;  %2046 = vmatmul.mubr.bf16.gmra.mrb[24].mxu1 %v936_v33 }
 0x1ec   : > { %v880_v37 = vadd.f32 %v1950_v36, %v2712_v59  ;;  %v919_v38 = vmax.f32 %v877_v35, 0.0 }
 0x1ee   : > { %v920_v39 = vmax.f32 %v880_v37, 0.0  ;;  %v1951_v40 = vpop.f32.mrb[60].mxu0 }
 0x1ef   : > { %v1952_v41 = vpop.f32.mrb[61].mxu0 }
 0x1f0   : > { %v1953_v42 = vadd.f32 %v1952_v41, %v1951_v40  ;;  %v1954_v43 = vpop.f32.mrb[62].mxu0  ;;  %v937_v44 = vpack.c.bf16 %v920_v39, %v919_v38 }
 0x1f1   : > { %v1955_v45 = vpop.f32.mrb[63].mxu0 }
 0x1f2   : > { %v885_v46 = vadd.f32 %v1953_v42, %v2712_v59  ;;  %v1956_v47 = vadd.f32 %v1955_v45, %v1954_v43  ;;  %2049 = vmatprep.mubr.bf16.mxu1 %v937_v44 }
 0x1f4   : > { %v888_v48 = vadd.f32 %v1956_v47, %v2712_v59  ;;  %v921_v49 = vmax.f32 %v885_v46, 0.0 }
 0x1f6   : > { %v922_v50 = vmax.f32 %v888_v48, 0.0 }
 0x1f8   : > { %v938_v51 = vpack.c.bf16 %v922_v50, %v921_v49 }
 0x1fa   : > { %2050 = vmatmul.mubr.bf16.gmra.mrb[28].mxu1 %v938_v51 }
 0x25d   : > { %v2023_v53 = vpop.f32.mrb[0].mxu1 }
 0x25e   : > { %v1053_v54 = vadd.f32 %v2023_v53, %v2749_v52  ;;  %v1044_v55 = vpop.f32.mrb[1].mxu1 }
 0x25f   : > { %v1045_v56 = vadd.f32 %v2749_v52, %v1044_v55  ;;  %v2024_v57 = vpop.f32.mrb[2].mxu1 }
 0x260   : > { %v1056_v58 = vadd.f32 %v2024_v57, %v2749_v52  ;;  %v1047_v60 = vpop.f32.mrb[3].mxu1  ;;  %v1173_v61 = vmax.f32 %v1053_v54, 0.0 }
 0x261   : > { %v1048_v59 = vadd.f32 %v2749_v52, %v1047_v60  ;;  %v1171_v63 = vmax.f32 %v1045_v56, 0.0 }
 0x262   : > { %v1174_v62 = vmax.f32 %v1056_v58, 0.0 }
 0x263   : > { %v1172_v0 = vmax.f32 %v1048_v59, 0.0 }
 0x264   : > { %v1204_v1 = vpack.c.bf16 %v1174_v62, %v1173_v61 }
 0x265   : > { %v1203_v2 = vpack.c.bf16 %v1172_v0, %v1171_v63 }
 0x267   : > { %2069 = vmatprep.mubr.bf16.mxu1 %v1203_v2 }
 0x268   : > { %2070 = vmatmul.mubr.bf16.vlgmr.msra.gmra.mrb[32].mxu1 %v1204_v1 }
 0x26d   : > { %v2027_v3 = vpop.f32.mrb[4].mxu1 }
 0x26e   : > { %v1069_v4 = vadd.f32 %v2027_v3, %v2749_v52  ;;  %v1060_v5 = vpop.f32.mrb[5].mxu1 }
 0x26f   : > { %v1061_v6 = vadd.f32 %v2749_v52, %v1060_v5  ;;  %v2028_v7 = vpop.f32.mrb[6].mxu1 }
 0x270   : > { %v1072_v8 = vadd.f32 %v2028_v7, %v2749_v52  ;;  %v1063_v9 = vpop.f32.mrb[7].mxu1  ;;  %v1177_v11 = vmax.f32 %v1069_v4, 0.0 }
 0x271   : > { %v1064_v10 = vadd.f32 %v2749_v52, %v1063_v9  ;;  %v1175_v13 = vmax.f32 %v1061_v6, 0.0 }
 0x272   : > { %v1178_v12 = vmax.f32 %v1072_v8, 0.0 }
 0x273   : > { %v1176_v14 = vmax.f32 %v1064_v10, 0.0 }
 0x274   : > { %v1206_v15 = vpack.c.bf16 %v1178_v12, %v1177_v11 }
 0x275   : > { %v1205_v16 = vpack.c.bf16 %v1176_v14, %v1175_v13 }
 0x277   : > { %2073 = vmatprep.mubr.bf16.mxu1 %v1205_v16 }
 0x278   : > { %2074 = vmatmul.mubr.bf16.gmra.mrb[36].mxu1 %v1206_v15 }
 0x27d   : > { %v2031_v17 = vpop.f32.mrb[8].mxu1 }
 0x27e   : > { %v1085_v18 = vadd.f32 %v2031_v17, %v2749_v52  ;;  %v1076_v19 = vpop.f32.mrb[9].mxu1 }
 0x27f   : > { %v1077_v20 = vadd.f32 %v2749_v52, %v1076_v19  ;;  %v2032_v21 = vpop.f32.mrb[10].mxu1 }
 0x280   : > { %v1088_v22 = vadd.f32 %v2032_v21, %v2749_v52  ;;  %v1079_v23 = vpop.f32.mrb[11].mxu1  ;;  %v1181_v25 = vmax.f32 %v1085_v18, 0.0 }
 0x281   : > { %v1080_v24 = vadd.f32 %v2749_v52, %v1079_v23  ;;  %v1179_v27 = vmax.f32 %v1077_v20, 0.0 }
 0x282   : > { %v1182_v26 = vmax.f32 %v1088_v22, 0.0 }
 0x283   : > { %v1180_v28 = vmax.f32 %v1080_v24, 0.0 }
 0x284   : > { %v1208_v29 = vpack.c.bf16 %v1182_v26, %v1181_v25 }
 0x285   : > { %v1207_v30 = vpack.c.bf16 %v1180_v28, %v1179_v27 }
 0x287   : > { %2077 = vmatprep.mubr.bf16.mxu1 %v1207_v30 }
 0x288   : > { %2078 = vmatmul.mubr.bf16.gmra.mrb[40].mxu1 %v1208_v29 }
 0x28d   : > { %v2035_v31 = vpop.f32.mrb[12].mxu1 }
 0x28e   : > { %v1101_v32 = vadd.f32 %v2035_v31, %v2749_v52  ;;  %v1092_v33 = vpop.f32.mrb[13].mxu1 }
 0x28f   : > { %v1093_v34 = vadd.f32 %v2749_v52, %v1092_v33  ;;  %v2036_v35 = vpop.f32.mrb[14].mxu1 }
 0x290   : > { %v1104_v36 = vadd.f32 %v2036_v35, %v2749_v52  ;;  %v1095_v37 = vpop.f32.mrb[15].mxu1  ;;  %v1185_v39 = vmax.f32 %v1101_v32, 0.0 }
 0x291   : > { %v1096_v38 = vadd.f32 %v2749_v52, %v1095_v37  ;;  %v1183_v41 = vmax.f32 %v1093_v34, 0.0 }
 0x292   : > { %v1186_v40 = vmax.f32 %v1104_v36, 0.0 }
 0x293   : > { %v1184_v42 = vmax.f32 %v1096_v38, 0.0  ;;  %v2786_v38 = vld [vmem:[%s2981_s6] ss:$0 sm:$0xff] }
 0x294   : > { %v1210_v43 = vpack.c.bf16 %v1186_v40, %v1185_v39 }
 0x295   : > { %v1209_v44 = vpack.c.bf16 %v1184_v42, %v1183_v41 }
 0x297   : > { %2081 = vmatprep.mubr.bf16.mxu1 %v1209_v44 }
 0x298   : > { %2082 = vmatmul.mubr.bf16.gmra.mrb[44].mxu1 %v1210_v43  ;;  %v2793_v43 = vld [vmem:[%s2982_s7] ss:$0 sm:$0xff] }
 0x29d   : > { %v2039_v45 = vpop.f32.mrb[16].mxu1 }
 0x29e   : > { %v1117_v46 = vadd.f32 %v2039_v45, %v2749_v52  ;;  %v1108_v47 = vpop.f32.mrb[17].mxu1 }
 0x29f   : > { %v1109_v48 = vadd.f32 %v2749_v52, %v1108_v47  ;;  %v2040_v49 = vpop.f32.mrb[18].mxu1 }
 0x2a0   : > { %v1120_v50 = vadd.f32 %v2040_v49, %v2749_v52  ;;  %v1111_v51 = vpop.f32.mrb[19].mxu1  ;;  %v1189_v54 = vmax.f32 %v1117_v46, 0.0 }
 0x2a1   : > { %v1112_v53 = vadd.f32 %v2749_v52, %v1111_v51  ;;  %v1187_v56 = vmax.f32 %v1109_v48, 0.0 }
 0x2a2   : > { %v1190_v55 = vmax.f32 %v1120_v50, 0.0 }
 0x2a3   : > { %v1188_v57 = vmax.f32 %v1112_v53, 0.0 }
 0x2a4   : > { %v1212_v58 = vpack.c.bf16 %v1190_v55, %v1189_v54 }
 0x2a5   : > { %v1211_v60 = vpack.c.bf16 %v1188_v57, %v1187_v56 }
 0x2a7   : > { %2085 = vmatprep.mubr.bf16.mxu1 %v1211_v60 }
 0x2a8   : > { %2086 = vmatmul.mubr.bf16.gmra.mrb[48].mxu1 %v1212_v58 }
 0x2ad   : > { %v2043_v59 = vpop.f32.mrb[20].mxu1 }
 0x2ae   : > { %v1133_v61 = vadd.f32 %v2043_v59, %v2749_v52  ;;  %v1124_v62 = vpop.f32.mrb[21].mxu1 }
 0x2af   : > { %v1125_v63 = vadd.f32 %v2749_v52, %v1124_v62  ;;  %v2044_v0 = vpop.f32.mrb[22].mxu1 }
 0x2b0   : > { %v1136_v1 = vadd.f32 %v2044_v0, %v2749_v52  ;;  %v1127_v2 = vpop.f32.mrb[23].mxu1  ;;  %v1193_v4 = vmax.f32 %v1133_v61, 0.0 }
 0x2b1   : > { %v1128_v3 = vadd.f32 %v2749_v52, %v1127_v2  ;;  %v1191_v6 = vmax.f32 %v1125_v63, 0.0 }
 0x2b2   : > { %v1194_v5 = vmax.f32 %v1136_v1, 0.0 }
 0x2b3   : > { %v1192_v7 = vmax.f32 %v1128_v3, 0.0 }
 0x2b4   : > { %v1214_v8 = vpack.c.bf16 %v1194_v5, %v1193_v4 }
 0x2b5   : > { %v1213_v9 = vpack.c.bf16 %v1192_v7, %v1191_v6 }
 0x2b7   : > { %2089 = vmatprep.mubr.bf16.mxu1 %v1213_v9 }
 0x2b8   : > { %2090 = vmatmul.mubr.bf16.gmra.mrb[52].mxu1 %v1214_v8 }
 0x2bd   : > { %v2047_v10 = vpop.f32.mrb[24].mxu1 }
 0x2be   : > { %v1149_v11 = vadd.f32 %v2047_v10, %v2749_v52  ;;  %v1140_v12 = vpop.f32.mrb[25].mxu1 }
 0x2bf   : > { %v1141_v13 = vadd.f32 %v2749_v52, %v1140_v12  ;;  %v2048_v14 = vpop.f32.mrb[26].mxu1 }
 0x2c0   : > { %v1152_v15 = vadd.f32 %v2048_v14, %v2749_v52  ;;  %v1143_v16 = vpop.f32.mrb[27].mxu1  ;;  %v1197_v18 = vmax.f32 %v1149_v11, 0.0 }
 0x2c1   : > { %v1144_v17 = vadd.f32 %v2749_v52, %v1143_v16  ;;  %v1195_v20 = vmax.f32 %v1141_v13, 0.0 }
 0x2c2   : > { %v1198_v19 = vmax.f32 %v1152_v15, 0.0 }
 0x2c3   : > { %v1196_v21 = vmax.f32 %v1144_v17, 0.0 }
 0x2c4   : > { %v1216_v22 = vpack.c.bf16 %v1198_v19, %v1197_v18 }
 0x2c5   : > { %v1215_v23 = vpack.c.bf16 %v1196_v21, %v1195_v20 }
 0x2c7   : > { %2093 = vmatprep.mubr.bf16.mxu1 %v1215_v23 }
 0x2c8   : > { %2094 = vmatmul.mubr.bf16.gmra.mrb[56].mxu1 %v1216_v22 }
 0x2cd   : > { %v2051_v24 = vpop.f32.mrb[28].mxu1 }
 0x2ce   : > { %v1165_v25 = vadd.f32 %v2051_v24, %v2749_v52  ;;  %v1156_v26 = vpop.f32.mrb[29].mxu1 }
 0x2cf   : > { %v1157_v27 = vadd.f32 %v2749_v52, %v1156_v26  ;;  %v2052_v28 = vpop.f32.mrb[30].mxu1 }
 0x2d0   : > { %v1168_v29 = vadd.f32 %v2052_v28, %v2749_v52  ;;  %v1159_v30 = vpop.f32.mrb[31].mxu1  ;;  %v1201_v32 = vmax.f32 %v1165_v25, 0.0 }
 0x2d1   : > { %v1160_v31 = vadd.f32 %v2749_v52, %v1159_v30  ;;  %v1199_v34 = vmax.f32 %v1157_v27, 0.0 }
 0x2d2   : > { %v1202_v33 = vmax.f32 %v1168_v29, 0.0 }
 0x2d3   : > { %v1200_v35 = vmax.f32 %v1160_v31, 0.0 }
 0x2d4   : > { %v1218_v36 = vpack.c.bf16 %v1202_v33, %v1201_v32 }
 0x2d5   : > { %v1217_v37 = vpack.c.bf16 %v1200_v35, %v1199_v34 }
 0x2d7   : > { %2097 = vmatprep.mubr.bf16.mxu1 %v1217_v37 }
 0x2d8   : > { %2098 = vmatmul.mubr.bf16.gmra.mrb[60].mxu1 %v1218_v36 }
 0x33b   : > { %v2071_v39 = vpop.f32.mrb[32].mxu1 }
 0x33c   : > { %v1333_v40 = vadd.f32 %v2071_v39, %v2786_v38  ;;  %v1324_v41 = vpop.f32.mrb[33].mxu1 }
 0x33d   : > { %v1325_v42 = vadd.f32 %v2786_v38, %v1324_v41  ;;  %v2072_v52 = vpop.f32.mrb[34].mxu1 }
 0x33e   : > { %v1453_v44 = vmax.f32 %v1333_v40, 0.0  ;;  %v1336_v45 = vadd.f32 %v2072_v52, %v2786_v38  ;;  %v1327_v46 = vpop.f32.mrb[35].mxu1 }
 0x33f   : > { %v1451_v47 = vmax.f32 %v1325_v42, 0.0  ;;  %v1328_v48 = vadd.f32 %v2786_v38, %v1327_v46 }
 0x340   : > { %v1454_v49 = vmax.f32 %v1336_v45, 0.0  ;;  %v1492_v50 = vmul.f32 %v2793_v43, %v1453_v44 }
 0x341   : > { %v1452_v51 = vmax.f32 %v1328_v48, 0.0  ;;  %v1490_v53 = vmul.f32 %v2793_v43, %v1451_v47 }
 0x342   : > { %1526 = vadd.xlane.f32.xlu1 %v1492_v50  ;;  %v1493_v54 = vmul.f32 %v2793_v43, %v1454_v49 }
 0x343   : > { %1522 = vadd.xlane.f32.xlu0 %v1490_v53  ;;  %v1491_v55 = vmul.f32 %v2793_v43, %v1452_v51 }
 0x346   : > { %1528 = vadd.xlane.f32.xlu1 %v1493_v54 }
 0x347   : > { %1524 = vadd.xlane.f32.xlu0 %v1491_v55 }
 0x34b   : > { %v2075_v56 = vpop.f32.mrb[36].mxu1 }
 0x34c   : > { %v1349_v57 = vadd.f32 %v2075_v56, %v2786_v38  ;;  %v1340_v58 = vpop.f32.mrb[37].mxu1 }
 0x34d   : > { %v1341_v60 = vadd.f32 %v2786_v38, %v1340_v58  ;;  %v2076_v59 = vpop.f32.mrb[38].mxu1 }
 0x34e   : > { %v1457_v61 = vmax.f32 %v1349_v57, 0.0  ;;  %v1352_v62 = vadd.f32 %v2076_v59, %v2786_v38  ;;  %v1343_v63 = vpop.f32.mrb[39].mxu1 }
 0x34f   : > { %v1344_v0 = vadd.f32 %v2786_v38, %v1343_v63  ;;  %v1455_v1 = vmax.f32 %v1341_v60, 0.0 }
 0x350   : > { %v1458_v2 = vmax.f32 %v1352_v62, 0.0  ;;  %v1496_v3 = vmul.f32 %v2793_v43, %v1457_v61 }
 0x351   : > { %v1456_v4 = vmax.f32 %v1344_v0, 0.0  ;;  %v1494_v6 = vmul.f32 %v2793_v43, %v1455_v1 }
 0x352   : > { %1534 = vadd.xlane.f32.xlu0 %v1496_v3  ;;  %v1497_v5 = vmul.f32 %v2793_v43, %v1458_v2 }
 0x353   : > { %v1495_v7 = vmul.f32 %v2793_v43, %v1456_v4 }
 0x354   : > { %1536 = vadd.xlane.f32.xlu1 %v1497_v5 }
 0x356   : > { %1530 = vadd.xlane.f32.xlu0 %v1494_v6 }
 0x358   : > { %1532 = vadd.xlane.f32.xlu1 %v1495_v7 }
 0x35b   : > { %v2079_v8 = vpop.f32.mrb[40].mxu1 }
 0x35c   : > { %v1365_v9 = vadd.f32 %v2079_v8, %v2786_v38  ;;  %v1356_v10 = vpop.f32.mrb[41].mxu1 }
 0x35d   : > { %v1357_v11 = vadd.f32 %v2786_v38, %v1356_v10  ;;  %v2080_v12 = vpop.f32.mrb[42].mxu1 }
 0x35e   : > { %v1461_v13 = vmax.f32 %v1365_v9, 0.0  ;;  %v1368_v14 = vadd.f32 %v2080_v12, %v2786_v38  ;;  %v1359_v15 = vpop.f32.mrb[43].mxu1 }
 0x35f   : > { %v1360_v16 = vadd.f32 %v2786_v38, %v1359_v15  ;;  %v1459_v17 = vmax.f32 %v1357_v11, 0.0 }
 0x360   : > { %v1462_v18 = vmax.f32 %v1368_v14, 0.0  ;;  %v1500_v19 = vmul.f32 %v2793_v43, %v1461_v13 }
 0x361   : > { %v1460_v20 = vmax.f32 %v1360_v16, 0.0  ;;  %v1498_v22 = vmul.f32 %v2793_v43, %v1459_v17 }
 0x362   : > { %1542 = vadd.xlane.f32.xlu0 %v1500_v19  ;;  %v1501_v21 = vmul.f32 %v2793_v43, %v1462_v18 }
 0x363   : > { %v1499_v23 = vmul.f32 %v2793_v43, %v1460_v20 }
 0x364   : > { %1544 = vadd.xlane.f32.xlu1 %v1501_v21 }
 0x366   : > { %1538 = vadd.xlane.f32.xlu0 %v1498_v22 }
 0x368   : > { %1540 = vadd.xlane.f32.xlu1 %v1499_v23 }
 0x36b   : > { %v2083_v24 = vpop.f32.mrb[44].mxu1 }
 0x36c   : > { %v1381_v25 = vadd.f32 %v2083_v24, %v2786_v38  ;;  %v1372_v26 = vpop.f32.mrb[45].mxu1 }
 0x36d   : > { %v1373_v27 = vadd.f32 %v2786_v38, %v1372_v26  ;;  %v2084_v28 = vpop.f32.mrb[46].mxu1 }
 0x36e   : > { %v1465_v29 = vmax.f32 %v1381_v25, 0.0  ;;  %v1384_v30 = vadd.f32 %v2084_v28, %v2786_v38  ;;  %v1375_v31 = vpop.f32.mrb[47].mxu1 }
 0x36f   : > { %v1376_v32 = vadd.f32 %v2786_v38, %v1375_v31  ;;  %v1463_v33 = vmax.f32 %v1373_v27, 0.0 }
 0x370   : > { %v1466_v34 = vmax.f32 %v1384_v30, 0.0  ;;  %v1504_v35 = vmul.f32 %v2793_v43, %v1465_v29 }
 0x371   : > { %v1464_v36 = vmax.f32 %v1376_v32, 0.0  ;;  %v1502_v39 = vmul.f32 %v2793_v43, %v1463_v33 }
 0x372   : > { %1550 = vadd.xlane.f32.xlu0 %v1504_v35  ;;  %v1505_v37 = vmul.f32 %v2793_v43, %v1466_v34 }
 0x373   : > { %v1503_v40 = vmul.f32 %v2793_v43, %v1464_v36 }
 0x374   : > { %1552 = vadd.xlane.f32.xlu1 %v1505_v37 }
 0x376   : > { %1546 = vadd.xlane.f32.xlu0 %v1502_v39 }
 0x378   : > { %1548 = vadd.xlane.f32.xlu1 %v1503_v40 }
 0x37b   : > { %v2087_v41 = vpop.f32.mrb[48].mxu1 }
 0x37c   : > { %v1397_v42 = vadd.f32 %v2087_v41, %v2786_v38  ;;  %v1388_v52 = vpop.f32.mrb[49].mxu1 }
 0x37d   : > { %v1389_v44 = vadd.f32 %v2786_v38, %v1388_v52  ;;  %v2088_v45 = vpop.f32.mrb[50].mxu1 }
 0x37e   : > { %v1469_v46 = vmax.f32 %v1397_v42, 0.0  ;;  %v1400_v47 = vadd.f32 %v2088_v45, %v2786_v38  ;;  %v1391_v48 = vpop.f32.mrb[51].mxu1 }
 0x37f   : > { %v1392_v49 = vadd.f32 %v2786_v38, %v1391_v48  ;;  %v1467_v50 = vmax.f32 %v1389_v44, 0.0 }
 0x380   : > { %v1470_v51 = vmax.f32 %v1400_v47, 0.0  ;;  %v1508_v53 = vmul.f32 %v2793_v43, %v1469_v46 }
 0x381   : > { %v1468_v54 = vmax.f32 %v1392_v49, 0.0  ;;  %v1506_v56 = vmul.f32 %v2793_v43, %v1467_v50 }
 0x382   : > { %1558 = vadd.xlane.f32.xlu0 %v1508_v53  ;;  %v1509_v55 = vmul.f32 %v2793_v43, %v1470_v51 }
 0x383   : > { %v1507_v57 = vmul.f32 %v2793_v43, %v1468_v54 }
 0x384   : > { %1560 = vadd.xlane.f32.xlu1 %v1509_v55 }
 0x386   : > { %1554 = vadd.xlane.f32.xlu0 %v1506_v56 }
 0x388   : > { %1556 = vadd.xlane.f32.xlu1 %v1507_v57 }
 0x38b   : > { %v2091_v58 = vpop.f32.mrb[52].mxu1 }
 0x38c   : > { %v1413_v60 = vadd.f32 %v2091_v58, %v2786_v38  ;;  %v1404_v59 = vpop.f32.mrb[53].mxu1 }
 0x38d   : > { %v1405_v61 = vadd.f32 %v2786_v38, %v1404_v59  ;;  %v2092_v62 = vpop.f32.mrb[54].mxu1 }
 0x38e   : > { %v1473_v63 = vmax.f32 %v1413_v60, 0.0  ;;  %v1416_v0 = vadd.f32 %v2092_v62, %v2786_v38  ;;  %v1407_v1 = vpop.f32.mrb[55].mxu1 }
 0x38f   : > { %v1408_v2 = vadd.f32 %v2786_v38, %v1407_v1  ;;  %v1471_v3 = vmax.f32 %v1405_v61, 0.0 }
 0x390   : > { %v1474_v4 = vmax.f32 %v1416_v0, 0.0  ;;  %v1512_v5 = vmul.f32 %v2793_v43, %v1473_v63 }
 0x391   : > { %v1472_v6 = vmax.f32 %v1408_v2, 0.0  ;;  %v1510_v8 = vmul.f32 %v2793_v43, %v1471_v3 }
 0x392   : > { %1566 = vadd.xlane.f32.xlu0 %v1512_v5  ;;  %v1513_v7 = vmul.f32 %v2793_v43, %v1474_v4 }
 0x393   : > { %v1511_v9 = vmul.f32 %v2793_v43, %v1472_v6 }
 0x394   : > { %1568 = vadd.xlane.f32.xlu1 %v1513_v7 }
 0x396   : > { %1562 = vadd.xlane.f32.xlu0 %v1510_v8 }
 0x398   : > { %1564 = vadd.xlane.f32.xlu1 %v1511_v9 }
 0x39b   : > { %v2095_v10 = vpop.f32.mrb[56].mxu1 }
 0x39c   : > { %v1429_v11 = vadd.f32 %v2095_v10, %v2786_v38  ;;  %v1420_v12 = vpop.f32.mrb[57].mxu1 }
 0x39d   : > { %v1421_v13 = vadd.f32 %v2786_v38, %v1420_v12  ;;  %v2096_v14 = vpop.f32.mrb[58].mxu1 }
 0x39e   : > { %v1477_v15 = vmax.f32 %v1429_v11, 0.0  ;;  %v1432_v16 = vadd.f32 %v2096_v14, %v2786_v38  ;;  %v1423_v17 = vpop.f32.mrb[59].mxu1 }
 0x39f   : > { %v1424_v18 = vadd.f32 %v2786_v38, %v1423_v17  ;;  %v1475_v19 = vmax.f32 %v1421_v13, 0.0 }
 0x3a0   : > { %v1478_v20 = vmax.f32 %v1432_v16, 0.0  ;;  %v1516_v21 = vmul.f32 %v2793_v43, %v1477_v15 }
 0x3a1   : > { %v1476_v22 = vmax.f32 %v1424_v18, 0.0  ;;  %v1514_v24 = vmul.f32 %v2793_v43, %v1475_v19 }
 0x3a2   : > { %1574 = vadd.xlane.f32.xlu0 %v1516_v21  ;;  %v1517_v23 = vmul.f32 %v2793_v43, %v1478_v20 }
 0x3a3   : > { %v1515_v25 = vmul.f32 %v2793_v43, %v1476_v22 }
 0x3a4   : > { %1576 = vadd.xlane.f32.xlu1 %v1517_v23 }
 0x3a6   : > { %1570 = vadd.xlane.f32.xlu0 %v1514_v24 }
 0x3a8   : > { %1572 = vadd.xlane.f32.xlu1 %v1515_v25 }
 0x3ab   : > { %v2099_v26 = vpop.f32.mrb[60].mxu1 }
 0x3ac   : > { %v1436_v27 = vpop.f32.mrb[61].mxu1  ;;  %v1445_v28 = vadd.f32 %v2099_v26, %v2786_v38 }
 0x3ad   : > { %v1437_v29 = vadd.f32 %v2786_v38, %v1436_v27  ;;  %v2100_v30 = vpop.f32.mrb[62].mxu1 }
 0x3ae   : > { %v1439_v31 = vpop.f32.mrb[63].mxu1  ;;  %v1448_v33 = vadd.f32 %v2100_v30, %v2786_v38  ;;  %v1481_v35 = vmax.f32 %v1445_v28, 0.0 }
 0x3af   : > { %v1479_v32 = vmax.f32 %v1437_v29, 0.0  ;;  %v1440_v34 = vadd.f32 %v2786_v38, %v1439_v31  ;;  %v2859_v38 = vld [vmem:[#allocation2] ss:$0 sm:$0xff] }
 0x3b0   : > { %v1482_v39 = vmax.f32 %v1448_v33, 0.0  ;;  %v1520_v41 = vmul.f32 %v2793_v43, %v1481_v35 }
 0x3b1   : > { %v1480_v36 = vmax.f32 %v1440_v34, 0.0  ;;  %v1518_v37 = vmul.f32 %v2793_v43, %v1479_v32 }
 0x3b2   : > { %v1521_v42 = vmul.f32 %v2793_v43, %v1482_v39 }
 0x3b3   : > { %1578 = vadd.xlane.f32.xlu0 %v1518_v37  ;;  %v1519_v40 = vmul.f32 %v2793_v43, %v1480_v36 }
 0x3b5   : > { %1580 = vadd.xlane.f32.xlu1 %v1519_v40 }
 0x3b7   : > { %1582 = vadd.xlane.f32.xlu0 %v1520_v41 }
 0x3b9   : > { %1584 = vadd.xlane.f32.xlu1 %v1521_v42 }
 0x3cf   : > { %v1527_v43 = vpop.xlane.xlu1 %1526 }
 0x3d0   : > { %v1595_v52 = vadd.f32 %v2859_v38, %v1527_v43  ;;  %v1523_v44 = vpop.xlane.xlu0 %1522 }
 0x3d1   : > { %v1593_v45 = vadd.f32 %v2859_v38, %v1523_v44 }
 0x3d2   : > { %1628 = vst.msk [vmem:[%s2864_s20 + $0x10] sm:$0xff] %vm1625_vm0, %v1595_v52 }
 0x3d3   : > { %1626 = vst.msk [vmem:[%s2864_s20] sm:$0xff] %vm1625_vm0, %v1593_v45  ;;  %v1529_v46 = vpop.xlane.xlu1 %1528 }
 0x3d4   : > { %v1596_v47 = vadd.f32 %v2859_v38, %v1529_v46  ;;  %v1525_v48 = vpop.xlane.xlu0 %1524 }
 0x3d5   : > { %v1594_v49 = vadd.f32 %v2859_v38, %v1525_v48 }
 0x3d6   : > { %1629 = vst.msk [vmem:[%s2864_s20 + $0x18] sm:$0xff] %vm1625_vm0, %v1596_v47 }
 0x3d7   : > { %1627 = vst.msk [vmem:[%s2864_s20 + $0x8] sm:$0xff] %vm1625_vm0, %v1594_v49 }
 0x3df   : > { %v1535_v50 = vpop.xlane.xlu0 %1534 }
 0x3e0   : > { %v1599_v51 = vadd.f32 %v2859_v38, %v1535_v50 }
 0x3e1   : > { %v1537_v53 = vpop.xlane.xlu1 %1536 }
 0x3e2   : > { %1632 = vst.msk [vmem:[%s2864_s20 + $0x30] sm:$0xff] %vm1625_vm0, %v1599_v51  ;;  %v1600_v54 = vadd.f32 %v2859_v38, %v1537_v53 }
 0x3e3   : > { %v1531_v55 = vpop.xlane.xlu0 %1530 }
 0x3e4   : > { %1633 = vst.msk [vmem:[%s2864_s20 + $0x38] sm:$0xff] %vm1625_vm0, %v1600_v54  ;;  %v1597_v56 = vadd.f32 %v2859_v38, %v1531_v55 }
 0x3e5   : > { %v1533_v57 = vpop.xlane.xlu1 %1532 }
 0x3e6   : > { %1630 = vst.msk [vmem:[%s2864_s20 + $0x20] sm:$0xff] %vm1625_vm0, %v1597_v56  ;;  %v1598_v58 = vadd.f32 %v2859_v38, %v1533_v57 }
 0x3e8   : > { %1631 = vst.msk [vmem:[%s2864_s20 + $0x28] sm:$0xff] %vm1625_vm0, %v1598_v58 }
 0x3ef   : > { %v1543_v60 = vpop.xlane.xlu0 %1542 }
 0x3f0   : > { %v1603_v59 = vadd.f32 %v2859_v38, %v1543_v60 }
 0x3f1   : > { %v1545_v61 = vpop.xlane.xlu1 %1544 }
 0x3f2   : > { %1636 = vst.msk [vmem:[%s2864_s20 + $0x50] sm:$0xff] %vm1625_vm0, %v1603_v59  ;;  %v1604_v62 = vadd.f32 %v2859_v38, %v1545_v61 }
 0x3f3   : > { %v1539_v63 = vpop.xlane.xlu0 %1538 }
 0x3f4   : > { %1637 = vst.msk [vmem:[%s2864_s20 + $0x58] sm:$0xff] %vm1625_vm0, %v1604_v62  ;;  %v1601_v0 = vadd.f32 %v2859_v38, %v1539_v63 }
 0x3f5   : > { %v1541_v1 = vpop.xlane.xlu1 %1540 }
 0x3f6   : > { %1634 = vst.msk [vmem:[%s2864_s20 + $0x40] sm:$0xff] %vm1625_vm0, %v1601_v0  ;;  %v1602_v2 = vadd.f32 %v2859_v38, %v1541_v1 }
 0x3f8   : > { %1635 = vst.msk [vmem:[%s2864_s20 + $0x48] sm:$0xff] %vm1625_vm0, %v1602_v2 }
 0x3ff   : > { %v1551_v3 = vpop.xlane.xlu0 %1550 }
 0x400   : > { %v1607_v4 = vadd.f32 %v2859_v38, %v1551_v3 }
 0x401   : > { %v1553_v5 = vpop.xlane.xlu1 %1552 }
 0x402   : > { %1640 = vst.msk [vmem:[%s2864_s20 + $0x70] sm:$0xff] %vm1625_vm0, %v1607_v4  ;;  %v1608_v6 = vadd.f32 %v2859_v38, %v1553_v5 }
 0x403   : > { %v1547_v7 = vpop.xlane.xlu0 %1546 }
 0x404   : > { %1641 = vst.msk [vmem:[%s2864_s20 + $0x78] sm:$0xff] %vm1625_vm0, %v1608_v6  ;;  %v1605_v8 = vadd.f32 %v2859_v38, %v1547_v7 }
 0x405   : > { %v1549_v9 = vpop.xlane.xlu1 %1548 }
 0x406   : > { %1638 = vst.msk [vmem:[%s2864_s20 + $0x60] sm:$0xff] %vm1625_vm0, %v1605_v8  ;;  %v1606_v10 = vadd.f32 %v2859_v38, %v1549_v9 }
 0x408   : > { %1639 = vst.msk [vmem:[%s2864_s20 + $0x68] sm:$0xff] %vm1625_vm0, %v1606_v10 }
 0x40f   : > { %v1559_v11 = vpop.xlane.xlu0 %1558 }
 0x410   : > { %v1611_v12 = vadd.f32 %v2859_v38, %v1559_v11 }
 0x411   : > { %v1561_v13 = vpop.xlane.xlu1 %1560 }
 0x412   : > { %1644 = vst.msk [vmem:[%s2864_s20 + $0x90] sm:$0xff] %vm1625_vm0, %v1611_v12  ;;  %v1612_v14 = vadd.f32 %v2859_v38, %v1561_v13 }
 0x413   : > { %v1555_v15 = vpop.xlane.xlu0 %1554 }
 0x414   : > { %1645 = vst.msk [vmem:[%s2864_s20 + $0x98] sm:$0xff] %vm1625_vm0, %v1612_v14  ;;  %v1609_v16 = vadd.f32 %v2859_v38, %v1555_v15 }
 0x415   : > { %v1557_v17 = vpop.xlane.xlu1 %1556 }
 0x416   : > { %1642 = vst.msk [vmem:[%s2864_s20 + $0x80] sm:$0xff] %vm1625_vm0, %v1609_v16  ;;  %v1610_v18 = vadd.f32 %v2859_v38, %v1557_v17 }
 0x418   : > { %1643 = vst.msk [vmem:[%s2864_s20 + $0x88] sm:$0xff] %vm1625_vm0, %v1610_v18 }
 0x41f   : > { %v1567_v19 = vpop.xlane.xlu0 %1566 }
 0x420   : > { %v1615_v20 = vadd.f32 %v2859_v38, %v1567_v19 }
 0x421   : > { %v1569_v21 = vpop.xlane.xlu1 %1568 }
 0x422   : > { %1648 = vst.msk [vmem:[%s2864_s20 + $0xb0] sm:$0xff] %vm1625_vm0, %v1615_v20  ;;  %v1616_v22 = vadd.f32 %v2859_v38, %v1569_v21 }
 0x423   : > { %v1563_v23 = vpop.xlane.xlu0 %1562 }
 0x424   : > { %1649 = vst.msk [vmem:[%s2864_s20 + $0xb8] sm:$0xff] %vm1625_vm0, %v1616_v22  ;;  %v1613_v24 = vadd.f32 %v2859_v38, %v1563_v23 }
 0x425   : > { %v1565_v25 = vpop.xlane.xlu1 %1564 }
 0x426   : > { %1646 = vst.msk [vmem:[%s2864_s20 + $0xa0] sm:$0xff] %vm1625_vm0, %v1613_v24  ;;  %v1614_v26 = vadd.f32 %v2859_v38, %v1565_v25 }
 0x428   : > { %1647 = vst.msk [vmem:[%s2864_s20 + $0xa8] sm:$0xff] %vm1625_vm0, %v1614_v26 }
 0x42f   : > { %v1575_v27 = vpop.xlane.xlu0 %1574 }
 0x430   : > { %v1619_v28 = vadd.f32 %v2859_v38, %v1575_v27 }
 0x431   : > { %v1577_v29 = vpop.xlane.xlu1 %1576 }
 0x432   : > { %1652 = vst.msk [vmem:[%s2864_s20 + $0xd0] sm:$0xff] %vm1625_vm0, %v1619_v28  ;;  %v1620_v30 = vadd.f32 %v2859_v38, %v1577_v29 }
 0x433   : > { %v1571_v31 = vpop.xlane.xlu0 %1570 }
 0x434   : > { %1653 = vst.msk [vmem:[%s2864_s20 + $0xd8] sm:$0xff] %vm1625_vm0, %v1620_v30  ;;  %v1617_v32 = vadd.f32 %v2859_v38, %v1571_v31 }
 0x435   : > { %v1573_v33 = vpop.xlane.xlu1 %1572 }
 0x436   : > { %1650 = vst.msk [vmem:[%s2864_s20 + $0xc0] sm:$0xff] %vm1625_vm0, %v1617_v32  ;;  %v1618_v34 = vadd.f32 %v2859_v38, %v1573_v33 }
 0x438   : > { %1651 = vst.msk [vmem:[%s2864_s20 + $0xc8] sm:$0xff] %vm1625_vm0, %v1618_v34 }
 0x440   : > { %v1579_v35 = vpop.xlane.xlu0 %1578 }
 0x441   : > { %v1621_v36 = vadd.f32 %v2859_v38, %v1579_v35 }
 0x442   : > { %v1581_v37 = vpop.xlane.xlu1 %1580 }
 0x443   : > { %1654 = vst.msk [vmem:[%s2864_s20 + $0xe0] sm:$0xff] %vm1625_vm0, %v1621_v36  ;;  %v1622_v39 = vadd.f32 %v2859_v38, %v1581_v37 }
 0x444   : > { %v1583_v40 = vpop.xlane.xlu0 %1582 }
 0x445   : > { %1655 = vst.msk [vmem:[%s2864_s20 + $0xe8] sm:$0xff] %vm1625_vm0, %v1622_v39  ;;  %v1623_v41 = vadd.f32 %v2859_v38, %v1583_v40 }
 0x446   : > { %v1585_v42 = vpop.xlane.xlu1 %1584 }
 0x447   : > { %1656 = vst.msk [vmem:[%s2864_s20 + $0xf0] sm:$0xff] %vm1625_vm0, %v1623_v41  ;;  %v1624_v43 = vadd.f32 %v2859_v38, %v1585_v42 }
 0x449   : > { %1657 = vst.msk [vmem:[%s2864_s20 + $0xf8] sm:$0xff] %vm1625_vm0, %v1624_v43 }
 0x44a PF: > { %p23_p11 = scmp.ge.s32.totalorder %s2607_s30, 4   ;;  %s3000_s11 = smov %s2403_s12 }
 0x44b   : > { %s3001_s12 = smov %s2407_s13  ;;  %s3002_s13 = smov %s2617_s26 }
 0x44c   : > { %s3003_s14 = smov %s2607_s30  ;;  %25 = sbr.rel (!%p23_p11) target bundleno = 8 (0x8), region = 108 }
 0x453   :  { %1680 = vsyncpa [#allocation4], 1 }
 0x454   :  { %1682 = vsyncpa [#allocation4 + $0x1], 1 }
 0x455   :  { %1683 = vsyncpa [#allocation6], 1 }
 0x456   :  { %1684 = vsyncpa [#allocation9], 1 }

</bundles_post_ra>
